<compile_context>
chip_gen: v6e
topology: v6e:2x2x1
jax: 0.10.0
libtpu: 0.0.40
codegen_flags: <defaults>
</compile_context>

<pallas_src>
import functools

import jax
import jax.numpy as jnp
from jax.experimental import pallas as pl
from jax.experimental.pallas import tpu as pltpu


def decoder_zinb_kernel(x_ref, w1_ref, b1_ref, wh_ref, bh_ref,
                        mean_ref, disp_ref, pi_ref, h_ref):
    # --- hidden layer: computed once per batch tile (j == 0), cached in VMEM ---
    @pl.when(pl.program_id(1) == 0)
    def _():
        h = jnp.dot(x_ref[...], w1_ref[...],
                    preferred_element_type=jnp.float32) + b1_ref[...]
        h_ref[...] = jnp.maximum(h, 0.0).astype(h_ref.dtype)

    tn = mean_ref.shape[1]

    # --- fused head matmul: one (block_b, H) @ (H, 3*tn) MXU pass ---
    z = jnp.dot(h_ref[...], wh_ref[...],
                preferred_element_type=jnp.float32) + bh_ref[...]
    zm = z[:, 0 * tn:1 * tn]
    zd = z[:, 1 * tn:2 * tn]
    zp = z[:, 2 * tn:3 * tn]

    # mean: clamp the exponent first (avoids inf), then exact clip -> identical
    # to clamp(exp(zm), 1e-5, 1e6) since exp(-12) < 1e-5 and exp(14) > 1e6.
    mean_ref[...] = jnp.clip(jnp.exp(jnp.clip(zm, -12.0, 14.0)),
                             1e-5, 1e6).astype(mean_ref.dtype)
    # disp: numerically-stable softplus, then clamp.
    disp_ref[...] = jnp.clip(jnp.logaddexp(zd, 0.0),
                             1e-4, 1e4).astype(disp_ref.dtype)
    # pi: sigmoid via a single tanh (one EUP op, no exp + divide).
    pi_ref[...] = (0.5 * jnp.tanh(0.5 * zp) + 0.5).astype(pi_ref.dtype)


@functools.partial(jax.jit,
                   static_argnames=("block_b", "block_n", "compute_dtype"))
def decoder_zinb(x, params, block_b=128, block_n=None,
                 compute_dtype=jnp.float32):
    B, D_in = x.shape
    H = params["w1"].shape[1]
    D_out = params["wm"].shape[1]

    block_b = min(block_b, B)
    assert B % block_b == 0 and (block_b % 8 == 0 or block_b == B), \
        "block_b must divide B and be a multiple of 8 (or equal B)"
    if block_n is None:
        block_n = D_out if D_out <= 512 else 512
    assert D_out % block_n == 0 and (block_n % 128 == 0 or block_n == D_out), \
        "block_n must divide D_out and be a multiple of 128 (or equal D_out)"
    n_tiles = D_out // block_n

    cd = compute_dtype
    x_c = x.astype(cd)
    w1 = params["w1"].astype(cd)
    b1 = params["b1"].astype(jnp.float32)

    # Pre-permute + fuse the three head weights per output tile:
    #   wh[j] = [Wm[:, j*tn:(j+1)*tn] | Wd[:, ...] | Wp[:, ...]]   (H, 3*tn)
    # (In production this would be done once at parameter-load time.)
    def tile_w(w):
        return w.astype(cd).reshape(H, n_tiles, block_n).transpose(1, 0, 2)

    def tile_b(b):
        return b.astype(jnp.float32).reshape(1, n_tiles, block_n).transpose(1, 0, 2)

    wh = jnp.concatenate(
        [tile_w(params["wm"]), tile_w(params["wd"]), tile_w(params["wp"])],
        axis=-1)                                   # (n_tiles, H, 3*block_n)
    bh = jnp.concatenate(
        [tile_b(params["bm"]), tile_b(params["bd"]), tile_b(params["bp"])],
        axis=-1)                                   # (n_tiles, 1, 3*block_n)

    grid = (B // block_b, n_tiles)
    out_shape = jax.ShapeDtypeStruct((B, D_out), jnp.float32)
    out_spec = pl.BlockSpec((block_b, block_n), lambda i, j: (i, j))

    # Note: w1/b1 have a constant index_map so they are DMA'd only once; at
    # these sizes their default double-buffer costs negligible VMEM, so no
    # explicit pipeline_mode override is needed.
    return pl.pallas_call(
        decoder_zinb_kernel,
        grid_spec=pltpu.PrefetchScalarGridSpec(
            num_scalar_prefetch=0,
            grid=grid,
            in_specs=[
                pl.BlockSpec((block_b, D_in), lambda i, j: (i, 0)),     # x
                pl.BlockSpec((D_in, H), lambda i, j: (0, 0)),           # W1
                pl.BlockSpec((1, H), lambda i, j: (0, 0)),              # b1
                pl.BlockSpec((None, H, 3 * block_n), lambda i, j: (j, 0, 0)),  # fused head W
                pl.BlockSpec((None, 1, 3 * block_n), lambda i, j: (j, 0, 0)),  # fused head b
            ],
            out_specs=[out_spec, out_spec, out_spec],
            scratch_shapes=[pltpu.VMEM((block_b, H), cd)],              # cached h
        ),
        out_shape=(out_shape, out_shape, out_shape),
        compiler_params=pltpu.CompilerParams(
            dimension_semantics=("parallel", "arbitrary")),
    )(x_c, w1, b1, wh, bh)


def init_params(key, input_dim, hidden_dim, output_dim):
    """Deterministic synthetic parameters with PyTorch-Linear-like init scale."""
    ks = jax.random.split(key, 8)

    def lin(kw, kb, fan_in, fan_out):
        bound = 1.0 / jnp.sqrt(fan_in)
        w = jax.random.uniform(kw, (fan_in, fan_out), jnp.float32, -bound, bound)
        b = jax.random.uniform(kb, (1, fan_out), jnp.float32, -bound, bound)
        return w, b

    w1, b1 = lin(ks[0], ks[1], input_dim, hidden_dim)
    wm, bm = lin(ks[2], ks[3], hidden_dim, output_dim)
    wd, bd = lin(ks[4], ks[5], hidden_dim, output_dim)
    wp, bp = lin(ks[6], ks[7], hidden_dim, output_dim)
    return dict(w1=w1, b1=b1, wm=wm, bm=bm, wd=wd, bd=bd, wp=wp, bp=bp)


def reference(x, p, compute_dtype=jnp.float32):
    """Pure-JAX reference that applies the same operand quantization the kernel
    uses (matmul operands + cached h in compute_dtype, everything else f32)."""
    q = lambda a: a.astype(compute_dtype).astype(jnp.float32)
    h = jnp.maximum(q(x) @ q(p["w1"]) + p["b1"], 0.0)
    h = q(h)
    mean = jnp.clip(jnp.exp(h @ q(p["wm"]) + p["bm"]), 1e-5, 1e6)
    disp = jnp.clip(jax.nn.softplus(h @ q(p["wd"]) + p["bd"]), 1e-4, 1e4)
    pi = jax.nn.sigmoid(h @ q(p["wp"]) + p["bp"])
    return mean, disp, pi


if __name__ == "__main__":
    # Small shapes consistent with the module: batch=64, latent input_dim=32,
    # hidden_dim=128 (module default), output_dim (genes)=256.
    jax.config.update("jax_default_matmul_precision", "highest")

    B, D_IN, H, D_OUT = 64, 32, 128, 256

    key = jax.random.PRNGKey(0)
    kx, kp = jax.random.split(key)
    x = jax.random.normal(kx, (B, D_IN), jnp.float32)
    params = init_params(kp, D_IN, H, D_OUT)

    # f32 path: exercises the 2-D grid (2 batch tiles x 2 output tiles).
    mean, disp, pi = decoder_zinb(x, params, block_b=32, block_n=128,
                                  compute_dtype=jnp.float32)
    jax.block_until_ready((mean, disp, pi))

    rm, rd, rp = reference(x, params, jnp.float32)
    assert jnp.allclose(mean, rm, rtol=1e-5, atol=1e-5)
    assert jnp.allclose(disp, rd, rtol=1e-5, atol=1e-5)
    assert jnp.allclose(pi, rp, rtol=1e-5, atol=1e-5)

    # bf16 MXU-operand path (f32 accumulation, f32 elementwise): checked against
    # a reference that applies the same operand rounding.
    mean16, disp16, pi16 = decoder_zinb(x, params, block_b=32, block_n=128,
                                        compute_dtype=jnp.bfloat16)
    jax.block_until_ready((mean16, disp16, pi16))

    qm, qd, qp = reference(x, params, jnp.bfloat16)
    assert jnp.allclose(mean16, qm, rtol=2e-3, atol=2e-3)
    assert jnp.allclose(disp16, qd, rtol=2e-3, atol=2e-3)
    assert jnp.allclose(pi16, qp, rtol=2e-3, atol=2e-3)

    print("KERNEL_OK")
</pallas_src>

<mosaic_0001>
module attributes {stable_mosaic.version = 11 : i64} {
  func.func @decoder_zinb_kernel(%arg0: i32, %arg1: i32, %arg2: memref<32x32xf32, #tpu.memory_space<vmem>>, %arg3: memref<32x128xf32, #tpu.memory_space<vmem>>, %arg4: memref<1x128xf32, #tpu.memory_space<vmem>>, %arg5: memref<1x128x384xf32, #tpu.memory_space<vmem>>, %arg6: memref<1x1x384xf32, #tpu.memory_space<vmem>>, %arg7: memref<32x128xf32, #tpu.memory_space<vmem>>, %arg8: memref<32x128xf32, #tpu.memory_space<vmem>>, %arg9: memref<32x128xf32, #tpu.memory_space<vmem>>, %arg10: memref<32x128xf32, #tpu.memory_space<vmem>>) attributes {dimension_semantics = [#tpu.dimension_semantics<parallel>, #tpu.dimension_semantics<arbitrary>], iteration_bounds = array<i64: 2, 2>, scalar_prefetch = 0 : i64, scratch_operands = 1 : i64, tpu.core_type = #tpu.core_type<tc>, window_params = [{transform_indices = @transform_0, window_bounds = array<i64: 32, 32>}, {pipeline_mode = #tpu.pipeline_mode<synchronous>, transform_indices = @transform_1, window_bounds = array<i64: 32, 128>}, {pipeline_mode = #tpu.pipeline_mode<synchronous>, transform_indices = @transform_2, window_bounds = array<i64: 1, 128>}, {transform_indices = @transform_3, window_bounds = array<i64: 1, 128, 384>}, {transform_indices = @transform_4, window_bounds = array<i64: 1, 1, 384>}, {transform_indices = @transform_5, window_bounds = array<i64: 32, 128>}, {transform_indices = @transform_6, window_bounds = array<i64: 32, 128>}, {transform_indices = @transform_7, window_bounds = array<i64: 32, 128>}]} {
    %c0_i32 = arith.constant 0 : i32
    %0 = arith.cmpi eq, %arg1, %c0_i32 : i32
    %1 = arith.extui %0 : i1 to i32
    %c0_i32_0 = arith.constant 0 : i32
    %2 = arith.cmpi ne, %1, %c0_i32_0 : i32
    scf.if %2 {
      %c0_25 = arith.constant 0 : index
      %c0_26 = arith.constant 0 : index
      %51 = vector.load %arg2[%c0_25, %c0_26] : memref<32x32xf32, #tpu.memory_space<vmem>>, vector<32x32xf32>
      %c0_27 = arith.constant 0 : index
      %c0_28 = arith.constant 0 : index
      %52 = vector.load %arg3[%c0_27, %c0_28] : memref<32x128xf32, #tpu.memory_space<vmem>>, vector<32x128xf32>
      %cst_29 = arith.constant dense<0.000000e+00> : vector<32x128xf32>
      %53 = tpu.matmul %51, %52, %cst_29 {dimension_numbers = #tpu.dot_dimension_numbers<[1], [0], [0], [1], [0, 0, 1, 1], [], []>, precision = #tpu.contract_precision<fp32>} : vector<32x32xf32>, vector<32x128xf32>, vector<32x128xf32> -> vector<32x128xf32>
      %c0_30 = arith.constant 0 : index
      %c0_31 = arith.constant 0 : index
      %54 = vector.load %arg4[%c0_30, %c0_31] : memref<1x128xf32, #tpu.memory_space<vmem>>, vector<1x128xf32>
      %55 = vector.broadcast %54 : vector<1x128xf32> to vector<32x128xf32>
      %56 = arith.addf %53, %55 : vector<32x128xf32>
      %cst_32 = arith.constant 0.000000e+00 : f32
      %57 = vector.broadcast %cst_32 : f32 to vector<32x128xf32>
      %58 = arith.maximumf %56, %57 : vector<32x128xf32>
      %c0_33 = arith.constant 0 : index
      %c0_34 = arith.constant 0 : index
      %59 = vector.load %arg10[%c0_33, %c0_34] : memref<32x128xf32, #tpu.memory_space<vmem>>, vector<32x128xf32>
      tpu.vector_store %arg10[%c0_33, %c0_34], %58 {strides = array<i32>} : memref<32x128xf32, #tpu.memory_space<vmem>>, vector<32x128xf32>,
    } else {
    }
    %c0 = arith.constant 0 : index
    %c0_1 = arith.constant 0 : index
    %3 = vector.load %arg10[%c0, %c0_1] : memref<32x128xf32, #tpu.memory_space<vmem>>, vector<32x128xf32>
    %c0_2 = arith.constant 0 : index
    %c0_3 = arith.constant 0 : index
    %c0_4 = arith.constant 0 : index
    %4 = vector.load %arg5[%c0_2, %c0_3, %c0_4] : memref<1x128x384xf32, #tpu.memory_space<vmem>>, vector<1x128x384xf32>
    %5 = vector.shape_cast %4 : vector<1x128x384xf32> to vector<128x384xf32>
    %cst = arith.constant dense<0.000000e+00> : vector<32x384xf32>
    %6 = tpu.matmul %3, %5, %cst {dimension_numbers = #tpu.dot_dimension_numbers<[1], [0], [0], [1], [0, 0, 1, 1], [], []>, precision = #tpu.contract_precision<fp32>} : vector<32x128xf32>, vector<128x384xf32>, vector<32x384xf32> -> vector<32x384xf32>
    %c0_5 = arith.constant 0 : index
    %c0_6 = arith.constant 0 : index
    %c0_7 = arith.constant 0 : index
    %7 = vector.load %arg6[%c0_5, %c0_6, %c0_7] : memref<1x1x384xf32, #tpu.memory_space<vmem>>, vector<1x1x384xf32>
    %8 = vector.shape_cast %7 : vector<1x1x384xf32> to vector<1x384xf32>
    %9 = vector.broadcast %8 : vector<1x384xf32> to vector<32x384xf32>
    %10 = arith.addf %6, %9 : vector<32x384xf32>
    %11 = vector.extract_strided_slice %10 {offsets = [0, 0], sizes = [32, 128], strides = [1, 1]} : vector<32x384xf32> to vector<32x128xf32>
    %12 = vector.extract_strided_slice %10 {offsets = [0, 128], sizes = [32, 128], strides = [1, 1]} : vector<32x384xf32> to vector<32x128xf32>
    %13 = vector.extract_strided_slice %10 {offsets = [0, 256], sizes = [32, 128], strides = [1, 1]} : vector<32x384xf32> to vector<32x128xf32>
    %cst_8 = arith.constant -1.200000e+01 : f32
    %cst_9 = arith.constant 1.400000e+01 : f32
    %14 = vector.broadcast %cst_8 : f32 to vector<32x128xf32>
    %15 = arith.maximumf %14, %11 : vector<32x128xf32>
    %16 = vector.broadcast %cst_9 : f32 to vector<32x128xf32>
    %17 = arith.minimumf %16, %15 : vector<32x128xf32>
    %18 = math.exp %17 : vector<32x128xf32>
    %cst_10 = arith.constant 9.99999974E-6 : f32
    %cst_11 = arith.constant 1.000000e+06 : f32
    %19 = vector.broadcast %cst_10 : f32 to vector<32x128xf32>
    %20 = arith.maximumf %19, %18 : vector<32x128xf32>
    %21 = vector.broadcast %cst_11 : f32 to vector<32x128xf32>
    %22 = arith.minimumf %21, %20 : vector<32x128xf32>
    %c0_12 = arith.constant 0 : index
    %c0_13 = arith.constant 0 : index
    %23 = vector.load %arg7[%c0_12, %c0_13] : memref<32x128xf32, #tpu.memory_space<vmem>>, vector<32x128xf32>
    tpu.vector_store %arg7[%c0_12, %c0_13], %22 {strides = array<i32>} : memref<32x128xf32, #tpu.memory_space<vmem>>, vector<32x128xf32>,
    %cst_14 = arith.constant 0.000000e+00 : f32
    %24 = vector.broadcast %cst_14 : f32 to vector<32x128xf32>
    %25 = arith.maximumf %12, %24 : vector<32x128xf32>
    %26 = vector.broadcast %cst_14 : f32 to vector<32x128xf32>
    %27 = arith.subf %12, %26 : vector<32x128xf32>
    %28 = arith.cmpf one, %27, %27 : vector<32x128xf32>
    %29 = vector.broadcast %cst_14 : f32 to vector<32x128xf32>
    %30 = arith.addf %12, %29 : vector<32x128xf32>
    %31 = math.absf %27 : vector<32x128xf32>
    %cst_15 = arith.constant 0.000000e+00 : f32
    %32 = vector.broadcast %cst_15 : f32 to vector<32x128xf32>
    %33 = arith.subf %32, %31 : vector<32x128xf32>
    %34 = math.exp %33 : vector<32x128xf32>
    %35 = math.log1p %34 : vector<32x128xf32>
    %36 = arith.addf %25, %35 : vector<32x128xf32>
    %37 = arith.select %28, %30, %36 : vector<32x128xi1>, vector<32x128xf32>
    %cst_16 = arith.constant 9.99999974E-5 : f32
    %cst_17 = arith.constant 1.000000e+04 : f32
    %38 = vector.broadcast %cst_16 : f32 to vector<32x128xf32>
    %39 = arith.maximumf %38, %37 : vector<32x128xf32>
    %40 = vector.broadcast %cst_17 : f32 to vector<32x128xf32>
    %41 = arith.minimumf %40, %39 : vector<32x128xf32>
    %c0_18 = arith.constant 0 : index
    %c0_19 = arith.constant 0 : index
    %42 = vector.load %arg8[%c0_18, %c0_19] : memref<32x128xf32, #tpu.memory_space<vmem>>, vector<32x128xf32>
    tpu.vector_store %arg8[%c0_18, %c0_19], %41 {strides = array<i32>} : memref<32x128xf32, #tpu.memory_space<vmem>>, vector<32x128xf32>,
    %cst_20 = arith.constant 5.000000e-01 : f32
    %43 = vector.broadcast %cst_20 : f32 to vector<32x128xf32>
    %44 = arith.mulf %43, %13 : vector<32x128xf32>
    %45 = math.tanh %44 : vector<32x128xf32>
    %cst_21 = arith.constant 5.000000e-01 : f32
    %46 = vector.broadcast %cst_21 : f32 to vector<32x128xf32>
    %47 = arith.mulf %46, %45 : vector<32x128xf32>
    %cst_22 = arith.constant 5.000000e-01 : f32
    %48 = vector.broadcast %cst_22 : f32 to vector<32x128xf32>
    %49 = arith.addf %47, %48 : vector<32x128xf32>
    %c0_23 = arith.constant 0 : index
    %c0_24 = arith.constant 0 : index
    %50 = vector.load %arg9[%c0_23, %c0_24] : memref<32x128xf32, #tpu.memory_space<vmem>>, vector<32x128xf32>
    tpu.vector_store %arg9[%c0_23, %c0_24], %49 {strides = array<i32>} : memref<32x128xf32, #tpu.memory_space<vmem>>, vector<32x128xf32>,
    return
  }
  func.func @transform_0(%arg0: i32, %arg1: i32) -> (i32, i32) {
    %c0_i32 = arith.constant 0 : i32
    %c0_i32_0 = arith.constant 0 : i32
    return %arg0, %c0_i32 : i32, i32
  }
  func.func @transform_1(%arg0: i32, %arg1: i32) -> (i32, i32) {
    %c0_i32 = arith.constant 0 : i32
    %c0_i32_0 = arith.constant 0 : i32
    %c0_i32_1 = arith.constant 0 : i32
    return %c0_i32, %c0_i32_0 : i32, i32
  }
  func.func @transform_2(%arg0: i32, %arg1: i32) -> (i32, i32) {
    %c0_i32 = arith.constant 0 : i32
    %c0_i32_0 = arith.constant 0 : i32
    %c0_i32_1 = arith.constant 0 : i32
    return %c0_i32, %c0_i32_0 : i32, i32
  }
  func.func @transform_3(%arg0: i32, %arg1: i32) -> (i32, i32, i32) {
    %c0_i32 = arith.constant 0 : i32
    %c0_i32_0 = arith.constant 0 : i32
    %c0_i32_1 = arith.constant 0 : i32
    return %arg1, %c0_i32, %c0_i32_0 : i32, i32, i32
  }
  func.func @transform_4(%arg0: i32, %arg1: i32) -> (i32, i32, i32) {
    %c0_i32 = arith.constant 0 : i32
    %c0_i32_0 = arith.constant 0 : i32
    %c0_i32_1 = arith.constant 0 : i32
    return %arg1, %c0_i32, %c0_i32_0 : i32, i32, i32
  }
  func.func @transform_5(%arg0: i32, %arg1: i32) -> (i32, i32) {
    %c0_i32 = arith.constant 0 : i32
    return %arg0, %arg1 : i32, i32
  }
  func.func @transform_6(%arg0: i32, %arg1: i32) -> (i32, i32) {
    %c0_i32 = arith.constant 0 : i32
    return %arg0, %arg1 : i32, i32
  }
  func.func @transform_7(%arg0: i32, %arg1: i32) -> (i32, i32) {
    %c0_i32 = arith.constant 0 : i32
    return %arg0, %arg1 : i32, i32
  }
}

</mosaic_0001>

<bundles_post_ra>
// kernel: decoder_zinb.1
= control target key start
LH: loop header
LB: loop body
LE: loop exit
PB: predicated region body
PF: predicated region fallthrough
CT: control target
= control target key end

     0   :  { %13 = vsyncpa [#allocation4], 0  ;;  %s5553_s0 = inlined_call_operand.vmem [shape: f32[64,32], index: 0, kind: input, shape index: {}]   ;;  %s5554_s1 = inlined_call_operand.vmem [shape: f32[32,128], index: 1, kind: input, shape index: {}]   ;;  %s5555_s2 = inlined_call_operand.vmem [shape: f32[1,128], index: 2, kind: input, shape index: {}]   ;;  %s5556_s3 = inlined_call_operand.vmem [shape: f32[2,128,384], index: 3, kind: input, shape index: {}]   ;;  %s5557_s4 = inlined_call_operand.vmem [shape: f32[2,1,384], index: 4, kind: input, shape index: {}]   ;;  %s5558_s5 = inlined_call_operand.hbm [shape: f32[64,256], index: 5, kind: output, shape index: {0}]   ;;  %s5559_s6 = inlined_call_operand.hbm [shape: f32[64,256], index: 6, kind: output, shape index: {1}]   ;;  %s5560_s7 = inlined_call_operand.hbm [shape: f32[64,256], index: 7, kind: output, shape index: {2}]  }
   0x1   :  { %15 = vsyncpa [#allocation4 + $0x1], 0 }
   0x2   :  { %16 = vsyncpa [#allocation6], 0 }
   0x3   :  { %18 = vsyncpa [#allocation6 + $0x1], 0  ;;  %s4034_s24 = smov 0   ;;  %s4036_s25 = smov 0  }
   0x4   :  { %s4038_s26 = smov 0   ;;  %s4040_s27 = smov 0  }
   0x5   :  { %s4042_s28 = smov 0   ;;  %s4044_s29 = smov 0  }
   0x6   :  { %s4046_s30 = smov 0   ;;  %s4048_s8 = smov 0  }
   0x7 LB: > { %5657 = sst [smem:[#allocation10_spill]] %s3965_s26  ;;  %s5562_s9 = sadd.s32 4294967295, %s3985_s8   ;;  %s3985_s8 = sphi %s4048_s8, %s24_s8   ;;  %s3981_s30 = sphi %s4046_s30, %s5790_s30   ;;  %s3977_s29 = sphi %s4044_s29, %s5789_s29   ;;  %s3973_s28 = sphi %s4042_s28, %s5794_s28   ;;  %s3969_s27 = sphi %s4040_s27, %s5793_s27   ;;  %s3965_s26 = sphi %s4038_s26, %s5786_s26   ;;  %s3961_s25 = sphi %s4036_s25, %s5792_s25   ;;  %s3957_s24 = sphi %s4034_s24, %s5791_s24  }
   0x8   : > { %5658 = sst [smem:[#allocation11_spill]] %s3977_s29  ;;  %s5561_s10 = sadd.s32 4294967294, %s3985_s8  }
   0x9   : > { %5659 = sst [smem:[#allocation12_spill]] %s3981_s30  ;;  %s33_s11 = sadd.s32 1, %s3977_s29 }
   0xa   : > { %p34_p0 = scmp.ge.s32.totalorder %s33_s11, 2  ;;  %s36_s12 = sadd.s32 1, %s3981_s30 }
   0xb   : > { %p175_p1 = scmp.ne.s32.totalorder %s3965_s26, %s3961_s25  ;;  %p176_p2 = scmp.eq.s32.totalorder %s5562_s9, 3 }
   0xc   : > { %s5796_s11 = smov (%p34_p0, %s33_s11), 0  ;;  %s5798_s12 = smov (!%p34_p0, %s36_s12), %s3981_s30 }
   0xd   : > { %5660 = sst [smem:[#allocation13_spill]] %s5796_s11  ;;  %s161_s13 = ssub.s32 %s3977_s29, %s5796_s11 }
   0xe   : > { %p4087_p3 = por %p176_p2, %p175_p1  ;;  %p38_p4 = scmp.ge.s32.totalorder %s5798_s12, 2 }
   0xf   : > { %p181_p5 = scmp.ne.s32.totalorder %s3961_s25, %s3957_s24  ;;  %p182_p6 = scmp.eq.s32.totalorder %s5561_s10, 3 }
  0x10   : > { %p3212_p7 = scmp.ge.s32.totalorder %s3985_s8, 1  ;;  %s5800_s12 = smov (%p38_p4, %s5798_s12), 0 }
  0x11   : > { %5662 = sst [smem:[#allocation14_spill]] %s5800_s12  ;;  %p4098_p8 = por %p182_p6, %p181_p5 }
  0x12   : > { %p286_p9 = scmp.lt.s32.totalorder %s3985_s8, 5  ;;  %s160_s16 = ssub.s32 %s3981_s30, %s5800_s12 }
  0x13   : > { %s5663_s15 = scalar_select %p4098_p8, 1, 0 }
  0x14   : > { %s165_s17 = sadd.s32 1, %s3965_s26  ;;  %s162_s18 = sor.u32 %s161_s13, %s160_s16 }
  0x15   : > { %5664 = sst [smem:[#allocation15_spill]] %s5663_s15  ;;  %p287_p10 = pnand %p3212_p7, %p286_p9 }
  0x16   : > { %p163_p11 = scmp.eq.s32.totalorder %s162_s18, 0 }
  0x17   : > { %290 = sbr.rel (%p287_p10) target bundleno = 763 (0x2fb), region = 40 }
  0x18   : > { %s4107_s19 = scalar_select %p163_p11, %s3965_s26, %s165_s17  }
  0x1a   : > { %5665 = sst [smem:[#allocation16_spill]] %s4107_s19 }
  0x1c   : > { %s5567_s20 = sand.u32 1, %s3961_s25   ;;  %s3216_s21 = sshll.u32 %s3973_s28, 2 }
  0x1d   : > { %s3213_s22 = sshll.u32 %s5567_s20, 5  ;;  %p338_p12 = scmp.lt.s32.totalorder %s3216_s21, 7 }
  0x1e   : > { %p343_p13 = scmp.lt.s32.totalorder %s3969_s27, 1  ;;  %s4128_s26 = scalar_lea.vmem [#allocation3], %s3213_s22 }
  0x1f   : > { %s5802_s21 = smov (!%p338_p12, %s3216_s21), 7  ;;  %s4130_s15 = scalar_lea.vmem [#allocation5], %s3213_s22 }
  0x20   : > { %s344_s23 = scalar_select %p343_p13, %s3969_s27, 1 }
  0x21   : > { %s3217_s10 = sshll.u32 %s5802_s21, 3  ;;  %s4132_s21 = scalar_lea.vmem [#allocation7], %s3213_s22 }
  0x22   : > { %s341_s17 = scalar_lea.vmem %s5553_s0, %s3217_s10  ;;  %s3718_s18 = smul.u32 384, %s344_s23 }
  0x23   : > { %s3719_s9 = smul.u32 3, %s344_s23  ;;  %p3219_p0 = scmp.ne.s32.totalorder %s3969_s27, 0 }
  0x24   : > { %s4121_s30 = scalar_lea.vmem %s5556_s3, %s3718_s18 }
  0x25   : > { %s4126_s20 = scalar_lea.vmem %s5557_s4, %s3719_s9  ;;  %358 = sbr.rel (%p3219_p0) target bundleno = 289 (0x121), region = 44 }
  0x2a   : > { %v366_v0 = vld [vmem:[%s5554_s1 + $0x18] sm:$0xff]  ;;  %v365_v1 = vld [vmem:[%s5554_s1 + $0x10] sm:$0xff]  ;;  %v364_v2 = vld [vmem:[%s5554_s1 + $0x8] sm:$0xff]  ;;  %vm374_vm0 = vcmask 261120  }
  0x2b   : > { %v4144_v3 = vand.u32 4294901760, %v366_v0  ;;  %v4146_v4 = vand.u32 4294901760, %v365_v1  ;;  %v4148_v5 = vand.u32 4294901760, %v364_v2  ;;  %v363_v6 = vld [vmem:[%s5554_s1] sm:$0xff]  ;;  %v360_v8 = vld [vmem:[%s341_s17 + $0x8] sm:$0xff]  ;;  %v361_v12 = vld [vmem:[%s341_s17 + $0x10] sm:$0xff] }
  0x2c   : > { %v359_v7 = vld [vmem:[%s341_s17] sm:$0xff]  ;;  %v4153_v9 = vand.u32 4294901760, %v363_v6  ;;  %v379_v11 = vsel %vm374_vm0, %v360_v8, 0  ;;  %v362_v13 = vld [vmem:[%s341_s17 + $0x18] sm:$0xff]  ;;  %v382_v19 = vsel %vm374_vm0, %v361_v12, 0 }
  0x2d   : > { %v376_v10 = vsel %vm374_vm0, %v359_v7, 0  ;;  %3406 = vmatprep.subr.mxu0 %v4144_v3  ;;  %v522_v14 = vsub.f32 %v366_v0, %v4144_v3  ;;  %v4161_v16 = vand.u32 4294901760, %v379_v11  ;;  %v529_v17 = vsub.f32 %v365_v1, %v4146_v4  ;;  %v3220_v59 = vld [vmem:[%s5555_s2] ss:$0 sm:$0xff] }
  0x2e   : > { %v4159_v15 = vand.u32 4294901760, %v376_v10  ;;  %3407 = vmatpush3.msra.mxu0 %v4144_v3  ;;  %v536_v18 = vsub.f32 %v364_v2, %v4148_v5  ;;  %v385_v20 = vsel %vm374_vm0, %v362_v13, 0  ;;  %v543_v21 = vsub.f32 %v363_v6, %v4153_v9 }
  0x2f   : > { %3408 = vmatprep.subr.mxu0 %v4146_v4  ;;  %v4170_v22 = vand.u32 4294901760, %v522_v14  ;;  %v4176_v24 = vsub.f32 %v379_v11, %v4161_v16  ;;  %v4178_v25 = vand.u32 4294901760, %v529_v17  ;;  %v4184_v27 = vand.u32 4294901760, %v382_v19 }
  0x30   : > { %v4173_v23 = vsub.f32 %v376_v10, %v4159_v15  ;;  %3428 = vmatprep.mubr.f32.mxu1 %v4159_v15  ;;  %3409 = vmatpush3.msra.mxu0 %v4146_v4  ;;  %v4182_v26 = vand.u32 4294901760, %v536_v18  ;;  %v4186_v28 = vand.u32 4294901760, %v385_v20  ;;  %v4188_v29 = vand.u32 4294901760, %v543_v21 }
  0x31   : > { %3410 = vmatprep.subr.mxu0 %v4148_v5  ;;  %v524_v30 = vsub.f32 %v522_v14, %v4170_v22  ;;  %v468_v32 = vand.u32 4294901760, %v4176_v24  ;;  %v531_v33 = vsub.f32 %v529_v17, %v4178_v25  ;;  %v4198_v35 = vsub.f32 %v382_v19, %v4184_v27 }
  0x32   : > { %v458_v31 = vand.u32 4294901760, %v4173_v23  ;;  %3411 = vmatpush3.msra.mxu0 %v4148_v5  ;;  %v538_v34 = vsub.f32 %v536_v18, %v4182_v26  ;;  %v4201_v36 = vsub.f32 %v385_v20, %v4186_v28  ;;  %v545_v43 = vsub.f32 %v543_v21, %v4188_v29 }
  0x33   : > { %3412 = vmatprep.subr.mxu0 %v4153_v9  ;;  %v525_v37 = vand.u32 4294901760, %v524_v30  ;;  %v469_v39 = vsub.f32 %v4176_v24, %v468_v32  ;;  %v532_v40 = vand.u32 4294901760, %v531_v33  ;;  %v478_v41 = vand.u32 4294901760, %v4198_v35 }
  0x34   : > { %v459_v38 = vsub.f32 %v4173_v23, %v458_v31  ;;  %3413 = vmatpush3.msra.mxu0 %v4153_v9  ;;  %v488_v42 = vand.u32 4294901760, %v4201_v36  ;;  %v539_v46 = vand.u32 4294901760, %v538_v34  ;;  %v546_v51 = vand.u32 4294901760, %v545_v43 }
  0x35   : > { %3420 = vmatprep.subr.mxu1 %v525_v37  ;;  %v470_v45 = vand.u32 4294901760, %v469_v39  ;;  %3434 = vmatprep.subr.mxu0 %v522_v14  ;;  %v479_v47 = vsub.f32 %v4198_v35, %v478_v41 }
  0x36   : > { %v460_v44 = vand.u32 4294901760, %v459_v38  ;;  %3421 = vmatpush3.msra.mxu1 %v525_v37  ;;  %v489_v48 = vsub.f32 %v4201_v36, %v488_v42 }
  0x37   : > { %3422 = vmatprep.subr.mxu1 %v532_v40  ;;  %v480_v49 = vand.u32 4294901760, %v479_v47 }
  0x38   : > { %3414 = vmatprep.mubr.f32.mxu0 %v460_v44  ;;  %3423 = vmatpush3.msra.mxu1 %v532_v40  ;;  %v490_v50 = vand.u32 4294901760, %v489_v48 }
  0x39   : > { %3415 = vmatmul.mubr.f32.vlgmr.msra.gmra.mxu0 %v470_v45  ;;  %3424 = vmatprep.subr.mxu1 %v539_v46 }
  0x3a   : > { %3435 = vmatpush3.msra.mxu0 %v522_v14  ;;  %3417 = vmatprep.mubr.f32.mxu0 %v480_v49 }
  0x3b   : > { %3436 = vmatprep.subr.mxu0 %v529_v17  ;;  %3425 = vmatpush3.msra.mxu1 %v539_v46 }
  0x3c   : > { %3437 = vmatpush3.msra.mxu0 %v529_v17  ;;  %3426 = vmatprep.subr.mxu1 %v546_v51 }
  0x3d   : > { %3418 = vmatmul.mubr.f32.gmra.mxu0 %v490_v50  ;;  %3438 = vmatprep.subr.mxu0 %v536_v18 }
  0x3e   : > { %3427 = vmatpush3.msra.mxu1 %v546_v51  ;;  %3439 = vmatpush3.msra.mxu0 %v536_v18 }
  0x3f   : > { %3429 = vmatmul.mubr.f32.vlgmr.msra.gmra.mxu1 %v4161_v16  ;;  %3440 = vmatprep.subr.mxu0 %v543_v21 }
  0x40   : > { %3448 = vmatprep.subr.mxu1 %v4144_v3  ;;  %3441 = vmatpush3.msra.mxu0 %v543_v21 }
  0x41   : > { %3442 = vmatprep.mubr.f32.mxu0 %v4173_v23  ;;  %3449 = vmatpush3.msra.mxu1 %v4144_v3 }
  0x42   : > { %3443 = vmatmul.mubr.f32.vlgmr.msra.gmra.mxu0 %v4176_v24  ;;  %3450 = vmatprep.subr.mxu1 %v4146_v4 }
  0x43   : > { %3462 = vmatprep.subr.mxu0 %v4170_v22  ;;  %3431 = vmatprep.mubr.f32.mxu1 %v4184_v27 }
  0x44   : > { %3451 = vmatpush3.msra.mxu1 %v4146_v4  ;;  %3463 = vmatpush3.msra.mxu0 %v4170_v22 }
  0x45   : > { %3432 = vmatmul.mubr.f32.gmra.mxu1 %v4186_v28  ;;  %3452 = vmatprep.subr.mxu1 %v4148_v5 }
  0x46   : > { %3464 = vmatprep.subr.mxu0 %v4178_v25  ;;  %3445 = vmatprep.mubr.f32.mxu0 %v4198_v35 }
  0x47   : > { %3453 = vmatpush3.msra.mxu1 %v4148_v5  ;;  %3465 = vmatpush3.msra.mxu0 %v4178_v25 }
  0x48   : > { %3454 = vmatprep.subr.mxu1 %v4153_v9  ;;  %3446 = vmatmul.mubr.f32.gmra.mxu0 %v4201_v36 }
  0x49   : > { %3466 = vmatprep.subr.mxu0 %v4182_v26  ;;  %3455 = vmatpush3.msra.mxu1 %v4153_v9 }
  0x4a   : > { %3456 = vmatprep.mubr.f32.mxu1 %v458_v31  ;;  %3467 = vmatpush3.msra.mxu0 %v4182_v26 }
  0x4b   : > { %3457 = vmatmul.mubr.f32.vlgmr.msra.gmra.mxu1 %v468_v32  ;;  %3468 = vmatprep.subr.mxu0 %v4188_v29 }
  0x4c   : > { %3476 = vmatprep.subr.mxu1 %v4144_v3  ;;  %3469 = vmatpush3.msra.mxu0 %v4188_v29 }
  0x4d   : > { %3470 = vmatprep.mubr.f32.mxu0 %v4159_v15  ;;  %3477 = vmatpush3.msra.mxu1 %v4144_v3 }
  0x4e   : > { %3471 = vmatmul.mubr.f32.vlgmr.msra.gmra.mxu0 %v4161_v16  ;;  %3478 = vmatprep.subr.mxu1 %v4146_v4 }
  0x4f   : > { %3459 = vmatprep.mubr.f32.mxu1 %v478_v41  ;;  %3479 = vmatpush3.msra.mxu1 %v4146_v4 }
  0x50   : > { %3473 = vmatprep.mubr.f32.mxu0 %v4184_v27  ;;  %3460 = vmatmul.mubr.f32.gmra.mxu1 %v488_v42 }
  0x51   : > { %3480 = vmatprep.subr.mxu1 %v4148_v5  ;;  %3484 = vmatprep.mubr.f32.mxu1 %v4159_v15 }
  0x52   : > { %3481 = vmatpush3.msra.mxu1 %v4148_v5  ;;  %3474 = vmatmul.mubr.f32.gmra.mxu0 %v4186_v28 }
  0x53   : > { %3482 = vmatprep.subr.mxu1 %v4153_v9 }
  0x54   : > { %3483 = vmatpush3.msra.mxu1 %v4153_v9 }
  0x55   : > { %3485 = vmatmul.mubr.f32.vlgmr.msra.gmra.mxu1 %v4161_v16 }
  0x56   : > { %3487 = vmatprep.mubr.f32.mxu1 %v4184_v27 }
  0x59   : > { %3488 = vmatmul.mubr.f32.gmra.mxu1 %v4186_v28 }
  0xf9   : > { %v3416_v52 = vpop.f32.mrf.mxu0 }
  0xfa   : > { %v473_v62 = vadd.f32 %v3416_v52, %v3220_v59 }
  0xfb   : > { %v462_v53 = vpop.f32.mrf.mxu0 }
  0xfc   : > { %v463_v1 = vadd.f32 %v3220_v59, %v462_v53 }
  0xfd   : > { %v3419_v54 = vpop.f32.mrf.mxu0 }
  0xfe   : > { %v493_v2 = vadd.f32 %v3419_v54, %v3220_v59 }
  0xff   : > { %v482_v55 = vpop.f32.mrf.mxu0  ;;  %v3430_v56 = vpop.f32.mrf.mxu1 }
 0x100   : > { %v590_v3 = vadd.f32 %v3430_v56, %v473_v62  ;;  %v483_v8 = vadd.f32 %v3220_v59, %v482_v55 }
 0x101   : > { %v583_v57 = vpop.f32.mrf.mxu1 }
 0x102   : > { %v3444_v58 = vpop.f32.mrf.mxu0  ;;  %v584_v6 = vadd.f32 %v583_v57, %v463_v1 }
 0x103   : > { %v689_v9 = vadd.f32 %v3444_v58, %v590_v3 }
 0x104   : > { %v681_v61 = vpop.f32.mrf.mxu0 }
 0x105   : > { %v3433_v60 = vpop.f32.mrf.mxu1  ;;  %v682_v12 = vadd.f32 %v681_v61, %v584_v6 }
 0x106   : > { %v602_v10 = vadd.f32 %v3433_v60, %v493_v2 }
 0x107   : > { %v595_v63 = vpop.f32.mrf.mxu1 }
 0x108   : > { %v3447_v0 = vpop.f32.mrf.mxu0  ;;  %v596_v13 = vadd.f32 %v595_v63, %v483_v8 }
 0x109   : > { %v703_v17 = vadd.f32 %v3447_v0, %v602_v10 }
 0x10a   : > { %v695_v4 = vpop.f32.mrf.mxu0 }
 0x10b   : > { %v3458_v5 = vpop.f32.mrf.mxu1  ;;  %v696_v21 = vadd.f32 %v695_v4, %v596_v13 }
 0x10c   : > { %v788_v14 = vadd.f32 %v3458_v5, %v689_v9 }
 0x10d   : > { %v779_v7 = vpop.f32.mrf.mxu1 }
 0x10e   : > { %v3472_v11 = vpop.f32.mrf.mxu0  ;;  %v780_v18 = vadd.f32 %v779_v7, %v682_v12 }
 0x10f   : > { %v893_v22 = vadd.f32 %v3472_v11, %v788_v14 }
 0x110   : > { %v886_v15 = vpop.f32.mrf.mxu0  ;;  %v3461_v16 = vpop.f32.mrf.mxu1 }
 0x111   : > { %v804_v23 = vadd.f32 %v3461_v16, %v703_v17  ;;  %v887_v25 = vadd.f32 %v886_v15, %v780_v18 }
 0x112   : > { %v795_v19 = vpop.f32.mrf.mxu1  ;;  %v3475_v20 = vpop.f32.mrf.mxu0 }
 0x113   : > { %v796_v26 = vadd.f32 %v795_v19, %v696_v21  ;;  %v905_v30 = vadd.f32 %v3475_v20, %v804_v23 }
 0x114   : > { %v898_v28 = vpop.f32.mrf.mxu0 }
 0x115   : > { %v3486_v24 = vpop.f32.mrf.mxu1  ;;  %v899_v34 = vadd.f32 %v898_v28, %v796_v26 }
 0x116   : > { %v986_v27 = vadd.f32 %v3486_v24, %v893_v22 }
 0x117   : > { %v979_v29 = vpop.f32.mrf.mxu1 }
 0x118   : > { %v1002_v31 = vmax.f32 %v986_v27, 0.0  ;;  %v980_v32 = vadd.f32 %v979_v29, %v887_v25 }
 0x119   : > { %v3489_v33 = vpop.f32.mrf.mxu1 }
 0x11a   : > { %1006 = vst [vmem:[#allocation2] sm:$0xff] %v1002_v31  ;;  %v1001_v35 = vmax.f32 %v980_v32, 0.0  ;;  %v998_v36 = vadd.f32 %v3489_v33, %v905_v30 }
 0x11b   : > { %v991_v37 = vpop.f32.mrf.mxu1 }
 0x11c   : > { %1005 = vst [vmem:[#allocation2 + $0x10] sm:$0xff] %v1001_v35  ;;  %v1004_v38 = vmax.f32 %v998_v36, 0.0  ;;  %v992_v39 = vadd.f32 %v991_v37, %v899_v34 }
 0x11e   : > { %1008 = vst [vmem:[#allocation2 + $0x8] sm:$0xff] %v1004_v38  ;;  %v1003_v40 = vmax.f32 %v992_v39, 0.0 }
 0x120   : > { %1007 = vst [vmem:[#allocation2 + $0x18] sm:$0xff] %v1003_v40 }
 0x121 PF: > { %v1059_v41 = vld [vmem:[%s4121_s30 + $0x170] sm:$0xff]  ;;  %v1058_v42 = vld [vmem:[%s4121_s30 + $0x168] sm:$0xff]  ;;  %v1056_v43 = vld [vmem:[%s4121_s30 + $0x158] sm:$0xff]  ;;  %v5584_v50 = vmov 0.0   ;;  %s3008_s18 = sshll.u32 %s4128_s26, 4  ;;  %s5781_s23 = sand.u32 1, %s3961_s25   ;;  %s5383_s18 = int_to_ptr.vmem [resolvable:$true] %s3008_s18 }
 0x122   : > { %v4265_v44 = vand.u32 4294901760, %v1059_v41  ;;  %v4267_v45 = vand.u32 4294901760, %v1058_v42  ;;  %v4269_v46 = vand.u32 4294901760, %v1056_v43  ;;  %v1055_v47 = vld [vmem:[%s4121_s30 + $0x150] sm:$0xff]  ;;  %v1053_v48 = vld [vmem:[%s4121_s30 + $0x140] sm:$0xff]  ;;  %v1052_v49 = vld [vmem:[%s4121_s30 + $0x138] sm:$0xff]  ;;  %1174 = vmatprep.mubr.f32.mxu0 %v5584_v50  ;;  %1443 = vmatprep.mubr.f32.mxu1 %v5584_v50 }
 0x123   : > { %v4276_v51 = vand.u32 4294901760, %v1055_v47  ;;  %v4278_v52 = vand.u32 4294901760, %v1053_v48  ;;  %v4280_v53 = vand.u32 4294901760, %v1052_v49  ;;  %v1050_v54 = vld [vmem:[%s4121_s30 + $0x128] sm:$0xff]  ;;  %v1049_v55 = vld [vmem:[%s4121_s30 + $0x120] sm:$0xff]  ;;  %v1047_v56 = vld [vmem:[%s4121_s30 + $0x110] sm:$0xff] }
 0x124   : > { %1079 = vmatprep.subr.mxu0 %v4265_v44  ;;  %v4286_v57 = vand.u32 4294901760, %v1050_v54  ;;  %v4288_v58 = vand.u32 4294901760, %v1049_v55  ;;  %v4290_v59 = vand.u32 4294901760, %v1047_v56  ;;  %v4293_v60 = vsub.f32 %v1059_v41, %v4265_v44  ;;  %v4296_v61 = vld [vmem:[%s4121_s30 + $0x108] sm:$0xff]  ;;  %v4299_v62 = vld [vmem:[%s4121_s30 + $0xf8] sm:$0xff]  ;;  %v4302_v63 = vld [vmem:[%s4121_s30 + $0xf0] sm:$0xff] }
 0x125   : > { %1081 = vmatpush1.msra.mxu0 %v4267_v45  ;;  %v4306_v0 = vand.u32 4294901760, %v4296_v61  ;;  %v4309_v1 = vsub.f32 %v1058_v42, %v4267_v45  ;;  %v4312_v2 = vand.u32 4294901760, %v4299_v62  ;;  %v4315_v3 = vsub.f32 %v1056_v43, %v4269_v46  ;;  %v4318_v4 = vld [vmem:[%s4121_s30 + $0xe0] sm:$0xff]  ;;  %v4321_v5 = vld [vmem:[%s4121_s30 + $0xd8] sm:$0xff]  ;;  %v4324_v6 = vld [vmem:[%s4121_s30 + $0xc8] sm:$0xff]  ;;  %s5392_s11 = scalar_lea.sflag [#allocation4], %s5781_s23 }
 0x126   : > { %1083 = vmatprep.subr.mxu0 %v4269_v46  ;;  %v5583_v7 = vand.u32 4294901760, %v4293_v60  ;;  %v4329_v8 = vand.u32 4294901760, %v4302_v63  ;;  %v4332_v9 = vsub.f32 %v1055_v47, %v4276_v51  ;;  %v4335_v10 = vand.u32 4294901760, %v4318_v4  ;;  %v4347_v15 = vld [vmem:[%s4121_s30 + $0xc0] sm:$0xff]  ;;  %v4372_v24 = vld [vmem:[%s4121_s30 + $0xb0] sm:$0xff]  ;;  %v4383_v29 = vld [vmem:[%s4121_s30 + $0xa8] sm:$0xff] }
 0x127   : > { %5666 = vst [vmem:[#allocation17_spill] sm:$0xff] %v4312_v2  ;;  %1085 = vmatpush1.msra.mxu0 %v4276_v51  ;;  %v5581_v11 = vand.u32 4294901760, %v4309_v1  ;;  %v5580_v12 = vand.u32 4294901760, %v4315_v3  ;;  %v4341_v13 = vsub.f32 %v1053_v48, %v4278_v52  ;;  %v4344_v14 = vand.u32 4294901760, %v4321_v5  ;;  %v4391_v34 = vld [vmem:[%s4121_s30 + $0x98] sm:$0xff]  ;;  %v4404_v39 = vld [vmem:[%s4121_s30 + $0x90] sm:$0xff] }
 0x128   : > { %5667 = vst [vmem:[#allocation18_spill] sm:$0xff] %v4329_v8  ;;  %5668 = vst [vmem:[#allocation19_spill] sm:$0xff] %v4335_v10  ;;  %1087 = vmatprep.subr.mxu0 %v4278_v52  ;;  %v1222_v16 = vsub.f32 %v4293_v60, %v5583_v7  ;;  %v5577_v17 = vand.u32 4294901760, %v4332_v9  ;;  %v4355_v18 = vsub.f32 %v1052_v49, %v4280_v53  ;;  %v4358_v19 = vand.u32 4294901760, %v4324_v6  ;;  %v4417_v47 = vld [vmem:[%s4121_s30 + $0x80] sm:$0xff]  ;;  %s3837_s12 = scalar_lea.vmem %s5383_s18, 512 }
 0x129   : > { %5669 = vst [vmem:[#allocation20_spill] sm:$0xff] %v4344_v14  ;;  %1089 = vmatpush1.msra.mxu0 %v4280_v53  ;;  %v1228_v20 = vsub.f32 %v4309_v1, %v5581_v11  ;;  %v1234_v21 = vsub.f32 %v4315_v3, %v5580_v12  ;;  %v5576_v22 = vand.u32 4294901760, %v4341_v13  ;;  %v4369_v23 = vsub.f32 %v1050_v54, %v4286_v57  ;;  %v4525_v11 = vld [vmem:[%s4121_s30 + $0x30] sm:$0xff]  ;;  %v4537_v7 = vld [vmem:[%s4121_s30 + $0x20] sm:$0xff]  ;;  %p3838_p1 = scmp.ne.s32.totalorder %s5383_s18, %s3837_s12  ;;  %s3988_s29 = smov [#allocation3]  }
 0x12a   : > { %5670 = vst [vmem:[#allocation21_spill] sm:$0xff] %v4358_v19  ;;  %1091 = vmatprep.subr.mxu0 %v4286_v57  ;;  %v1223_v25 = vand.u32 4294901760, %v1222_v16  ;;  %v1240_v26 = vsub.f32 %v4332_v9, %v5577_v17  ;;  %v5574_v27 = vand.u32 4294901760, %v4355_v18  ;;  %v4380_v28 = vand.u32 4294901760, %v4347_v15  ;;  %s3841_s9 = sshll.u32 %s3988_s29, 4  ;;  %s3842_s9 = int_to_ptr.vmem [resolvable:$false] %s3841_s9 }
 0x12b   : > { %1093 = vmatpush1.msra.mxu0 %v4288_v58  ;;  %v1229_v30 = vand.u32 4294901760, %v1228_v20  ;;  %v1235_v31 = vand.u32 4294901760, %v1234_v21  ;;  %v1246_v32 = vsub.f32 %v4341_v13, %v5576_v22  ;;  %v5573_v33 = vand.u32 4294901760, %v4369_v23  ;;  %v4500_v22 = vld [vmem:[%s4121_s30 + $0x48] sm:$0xff]  ;;  %p3839_p2 = pnand %p3838_p1, %p4087_p3  ;;  %p3844_p5 = scmp.lt.s32.totalorder %s5383_s18, %s3842_s9 }
 0x12c   : > { %5671 = vst [vmem:[#allocation22_spill] sm:$0xff] %v4380_v28  ;;  %1095 = vmatprep.subr.mxu0 %v4290_v59  ;;  %1224 = vmatprep.subr.mxu1 %v1223_v25  ;;  %v1241_v35 = vand.u32 4294901760, %v1240_v26  ;;  %v1252_v36 = vsub.f32 %v4355_v18, %v5574_v27  ;;  %v4398_v37 = vsub.f32 %v1049_v55, %v4288_v58  ;;  %v4401_v38 = vand.u32 4294901760, %v4372_v24 }
 0x12d   : > { %1097 = vmatpush1.msra.mxu0 %v4306_v0  ;;  %1230 = vmatpush1.msra.mxu1 %v1229_v30  ;;  %v1247_v40 = vand.u32 4294901760, %v1246_v32  ;;  %v1258_v41 = vsub.f32 %v4369_v23, %v5573_v33  ;;  %v4411_v42 = vsub.f32 %v1047_v56, %v4290_v59  ;;  %v4414_v43 = vand.u32 4294901760, %v4383_v29  ;;  %v4429_v56 = vld [vmem:[%s4121_s30 + $0x78] sm:$0xff]  ;;  %v4488_v33 = vld [vmem:[%s4121_s30 + $0x50] sm:$0xff]  ;;  %p3840_p4 = pneg %p3839_p2 }
 0x12e   : > { %5672 = vst [vmem:[#allocation23_spill] sm:$0xff] %v4401_v38  ;;  %1099 = vmatprep.subr.mxu0 %v4312_v2  ;;  %1236 = vmatprep.subr.mxu1 %v1235_v31  ;;  %v1253_v48 = vand.u32 4294901760, %v1252_v36  ;;  %v5571_v49 = vand.u32 4294901760, %v4398_v37  ;;  %v4423_v54 = vsub.f32 %v4296_v61, %v4306_v0  ;;  %v4426_v55 = vand.u32 4294901760, %v4391_v34  ;;  %v4453_v31 = vld [vmem:[%s4121_s30 + $0x68] sm:$0xff] }
 0x12f   : > { %5673 = vst [vmem:[#allocation24_spill] sm:$0xff] %v4414_v43  ;;  %1101 = vmatpush1.msra.mxu0 %v4329_v8  ;;  %1242 = vmatpush1.msra.mxu1 %v1241_v35  ;;  %v1259_v16 = vand.u32 4294901760, %v1258_v41  ;;  %v5570_v20 = vand.u32 4294901760, %v4411_v42  ;;  %v4435_v21 = vsub.f32 %v4299_v62, %v4312_v2  ;;  %v4438_v25 = vand.u32 4294901760, %v4404_v39 }
 0x130   : > { %5674 = vst [vmem:[#allocation25_spill] sm:$0xff] %v4426_v55  ;;  %1103 = vmatprep.subr.mxu0 %v4335_v10  ;;  %1248 = vmatprep.subr.mxu1 %v1247_v40  ;;  %v1264_v61 = vsub.f32 %v4398_v37, %v5571_v49  ;;  %v5572_v26 = vand.u32 4294901760, %v4423_v54  ;;  %v4447_v30 = vsub.f32 %v4302_v63, %v4329_v8  ;;  %v4450_v62 = vand.u32 4294901760, %v4417_v47 }
 0x131   : > { %5675 = vst [vmem:[#allocation26_spill] sm:$0xff] %v4438_v25  ;;  %1105 = vmatpush1.msra.mxu0 %v4344_v14  ;;  %1254 = vmatpush1.msra.mxu1 %v1253_v48  ;;  %v1270_v32 = vsub.f32 %v4411_v42, %v5570_v20  ;;  %v5575_v35 = vand.u32 4294901760, %v4435_v21  ;;  %v4462_v36 = vsub.f32 %v4318_v4, %v4335_v10  ;;  %v4465_v63 = vand.u32 4294901760, %v4429_v56  ;;  %v4477_v4 = vld [vmem:[%s4121_s30 + $0x60] sm:$0xff]  ;;  %v1009_v10 = vld [vmem:[#allocation2 + $0x10] sm:$0xff] }
 0x132   : > { %5676 = vst [vmem:[#allocation27_spill] sm:$0xff] %v4450_v62  ;;  %1107 = vmatprep.subr.mxu0 %v4358_v19  ;;  %1260 = vmatprep.subr.mxu1 %v1259_v16  ;;  %v1265_v40 = vand.u32 4294901760, %v1264_v61  ;;  %v1276_v41 = vsub.f32 %v4423_v54, %v5572_v26  ;;  %v5578_v48 = vand.u32 4294901760, %v4447_v30  ;;  %v4474_v20 = vsub.f32 %v4321_v5, %v4344_v14 }
 0x133   : > { %5677 = vst [vmem:[#allocation28_spill] sm:$0xff] %v4465_v63  ;;  %1109 = vmatpush1.msra.mxu0 %v4380_v28  ;;  %v1271_v49 = vand.u32 4294901760, %v1270_v32  ;;  %v1282_v16 = vsub.f32 %v4435_v21, %v5575_v35  ;;  %v5579_v61 = vand.u32 4294901760, %v4462_v36  ;;  %v4485_v26 = vand.u32 4294901760, %v4453_v31 }
 0x134   : > { %1266 = vmatpush1.msra.mxu1 %v1265_v40  ;;  %1111 = vmatprep.subr.mxu0 %v4401_v38  ;;  %v1277_v5 = vand.u32 4294901760, %v1276_v41  ;;  %v1288_v32 = vsub.f32 %v4447_v30, %v5578_v48  ;;  %v5582_v27 = vand.u32 4294901760, %v4474_v20  ;;  %v4497_v35 = vsub.f32 %v4324_v6, %v4358_v19  ;;  %v4514_v6 = vld [vmem:[%s4121_s30 + $0x38] sm:$0xff] }
 0x135   : > { %5678 = vst [vmem:[#allocation29_spill] sm:$0xff] %v4485_v26  ;;  %1272 = vmatprep.subr.mxu1 %v1271_v49  ;;  %1113 = vmatpush1.msra.mxu0 %v4414_v43  ;;  %v1283_v40 = vand.u32 4294901760, %v1282_v16  ;;  %v1294_v41 = vsub.f32 %v4462_v36, %v5579_v61  ;;  %v4507_v17 = vand.u32 4294901760, %v4477_v4  ;;  %v4511_v48 = vsub.f32 %v4347_v15, %v4380_v28 }
 0x136   : > { %1278 = vmatpush1.msra.mxu1 %v1277_v5  ;;  %1115 = vmatprep.subr.mxu0 %v4426_v55  ;;  %v1289_v49 = vand.u32 4294901760, %v1288_v32  ;;  %v1300_v16 = vsub.f32 %v4474_v20, %v5582_v27  ;;  %v5586_v61 = vand.u32 4294901760, %v4497_v35  ;;  %v4522_v12 = vand.u32 4294901760, %v4488_v33 }
 0x137   : > { %1284 = vmatprep.subr.mxu1 %v1283_v40  ;;  %1117 = vmatpush1.msra.mxu0 %v4438_v25  ;;  %v1295_v15 = vand.u32 4294901760, %v1294_v41  ;;  %v5591_v5 = vand.u32 4294901760, %v4511_v48  ;;  %v4531_v32 = vsub.f32 %v4372_v24, %v4401_v38  ;;  %v4534_v27 = vand.u32 4294901760, %v4500_v22 }
 0x138   : > { %1290 = vmatpush1.msra.mxu1 %v1289_v49  ;;  %1119 = vmatprep.subr.mxu0 %v4450_v62  ;;  %v1301_v50 = vand.u32 4294901760, %v1300_v16  ;;  %v1306_v40 = vsub.f32 %v4497_v35, %v5586_v61  ;;  %v4545_v41 = vsub.f32 %v4383_v29, %v4414_v43  ;;  %v4548_v24 = vand.u32 4294901760, %v4514_v6  ;;  %v4563_v29 = vld [vmem:[%s4121_s30 + $0x18] sm:$0xff] }
 0x139   : > { %5679 = vst [vmem:[#allocation30_spill] sm:$0xff] %v4534_v27  ;;  %1296 = vmatprep.subr.mxu1 %v1295_v15  ;;  %1121 = vmatpush1.msra.mxu0 %v4465_v63  ;;  %v1312_v49 = vsub.f32 %v4511_v48, %v5591_v5  ;;  %v4557_v61 = vsub.f32 %v4391_v34, %v4426_v55  ;;  %v4560_v38 = vand.u32 4294901760, %v4525_v11  ;;  %v4572_v16 = vand.u32 4294901760, %v4537_v7  ;;  %v4575_v34 = vld [vmem:[%s4121_s30 + $0x8] sm:$0xff] }
 0x13a   : > { %5680 = vst [vmem:[#allocation31_spill] sm:$0xff] %v4548_v24  ;;  %1302 = vmatpush1.msra.mxu1 %v1301_v50  ;;  %1123 = vmatprep.subr.mxu0 %v4485_v26  ;;  %v1307_v15 = vand.u32 4294901760, %v1306_v40  ;;  %v4569_v5 = vsub.f32 %v4404_v39, %v4438_v25  ;;  %v5684_v50 = vand.u32 4294901760, %v4531_v32  ;;  %v4584_v43 = vsub.f32 %v4417_v47, %v4450_v62  ;;  %v4599_v40 = vld [vmem:[%s4121_s30] sm:$0xff] }
 0x13b   : > { %5681 = vst [vmem:[#allocation32_spill] sm:$0xff] %v4557_v61  ;;  %5682 = vst [vmem:[#allocation33_spill] sm:$0xff] %v4560_v38  ;;  %1125 = vmatpush1.msra.mxu0 %v4507_v17  ;;  %v1313_v55 = vand.u32 4294901760, %v1312_v49  ;;  %v5685_v39 = vand.u32 4294901760, %v4545_v41  ;;  %v4592_v49 = vand.u32 4294901760, %v4563_v29  ;;  %v4607_v19 = vand.u32 4294901760, %v4575_v34 }
 0x13c   : > { %5683 = vst [vmem:[#allocation34_spill] sm:$0xff] %v4572_v16  ;;  %v1318_v28 = vsub.f32 %v4531_v32, %v5684_v50  ;;  %1308 = vmatprep.subr.mxu1 %v1307_v15  ;;  %1127 = vmatprep.subr.mxu0 %v4522_v12  ;;  %v4596_v50 = vsub.f32 %v4429_v56, %v4465_v63  ;;  %v5686_v15 = vand.u32 4294901760, %v4557_v61  ;;  %v5687_v56 = vand.u32 4294901760, %v4569_v5 }
 0x13d   : > { %v1324_v25 = vsub.f32 %v4545_v41, %v5685_v39  ;;  %1314 = vmatpush1.msra.mxu1 %v1313_v55  ;;  %1129 = vmatpush1.msra.mxu0 %v4534_v27  ;;  %v5610_v39 = vand.u32 4294901760, %v4584_v43  ;;  %v4616_v55 = vsub.f32 %v4453_v31, %v4485_v26  ;;  %v4623_v8 = vand.u32 4294901760, %v4599_v40 }
 0x13e   : > { %v1319_v47 = vand.u32 4294901760, %v1318_v28  ;;  %v1330_v62 = vsub.f32 %v4557_v61, %v5686_v15  ;;  %1131 = vmatprep.subr.mxu0 %v4548_v24  ;;  %v1336_v63 = vsub.f32 %v4569_v5, %v5687_v56  ;;  %v4627_v56 = vsub.f32 %v4477_v4, %v4507_v17 }
 0x13f   : > { %v1325_v14 = vand.u32 4294901760, %v1324_v25  ;;  %5688 = vst [vmem:[#allocation35_spill] sm:$0xff] %v4616_v55  ;;  %1133 = vmatpush1.msra.mxu0 %v4560_v38  ;;  %v1342_v25 = vsub.f32 %v4584_v43, %v5610_v39  ;;  %v5689_v31 = vand.u32 4294901760, %v4596_v50  ;;  %v4636_v39 = vsub.f32 %v4488_v33, %v4522_v12 }
 0x140   : > { %1320 = vmatprep.subr.mxu1 %v1319_v47  ;;  %v1331_v15 = vand.u32 4294901760, %v1330_v62  ;;  %v1337_v28 = vand.u32 4294901760, %v1336_v63  ;;  %1135 = vmatprep.subr.mxu0 %v4572_v16  ;;  %v5613_v47 = vand.u32 4294901760, %v4616_v55  ;;  %v5616_v4 = vand.u32 4294901760, %v4627_v56 }
 0x141   : > { %1326 = vmatpush1.msra.mxu1 %v1325_v14  ;;  %v1348_v62 = vsub.f32 %v4596_v50, %v5689_v31  ;;  %v1343_v26 = vand.u32 4294901760, %v1342_v25  ;;  %1137 = vmatpush1.msra.mxu0 %v4592_v49  ;;  %v4640_v14 = vand.u32 4294901760, %v1009_v10  ;;  %v4644_v63 = vsub.f32 %v4500_v22, %v4534_v27 }
 0x142   : > { %1332 = vmatprep.subr.mxu1 %v1331_v15  ;;  %1139 = vmatprep.subr.mxu0 %v4607_v19  ;;  %v1354_v33 = vsub.f32 %v4616_v55, %v5613_v47  ;;  %v4653_v25 = vsub.f32 %v4514_v6, %v4548_v24  ;;  %v1360_v22 = vsub.f32 %v4627_v56, %v5616_v4  ;;  %v5692_v6 = vand.u32 4294901760, %v4636_v39 }
 0x143   : > { %5690 = vst [vmem:[#allocation36_spill] sm:$0xff] %v4640_v14  ;;  %1338 = vmatpush1.msra.mxu1 %v1337_v28  ;;  %v1349_v31 = vand.u32 4294901760, %v1348_v62  ;;  %1141 = vmatpush1.msra.mxu0 %v4623_v8  ;;  %v4660_v28 = vsub.f32 %v1009_v10, %v4640_v14  ;;  %v4665_v47 = vsub.f32 %v4525_v11, %v4560_v38  ;;  %v5694_v11 = vand.u32 4294901760, %v4644_v63 }
 0x144   : > { %1344 = vmatprep.subr.mxu1 %v1343_v26  ;;  %v1355_v15 = vand.u32 4294901760, %v1354_v33  ;;  %v1366_v26 = vsub.f32 %v4636_v39, %v5692_v6  ;;  %1474 = vmatprep.subr.mxu0 %v4293_v60  ;;  %v5623_v24 = vand.u32 4294901760, %v4653_v25  ;;  %v4674_v10 = vsub.f32 %v4537_v7, %v4572_v16 }
 0x145   : > { %5691 = vst [vmem:[#allocation37_spill] sm:$0xff] %v4660_v28  ;;  %1350 = vmatpush1.msra.mxu1 %v1349_v31  ;;  %v1361_v4 = vand.u32 4294901760, %v1360_v22  ;;  %v4677_v62 = vand.u32 4294901760, %v4660_v28  ;;  %v1372_v31 = vsub.f32 %v4644_v63, %v5694_v11  ;;  %v5626_v33 = vand.u32 4294901760, %v4665_v47 }
 0x146   : > { %1356 = vmatprep.subr.mxu1 %v1355_v15  ;;  %v1367_v6 = vand.u32 4294901760, %v1366_v26  ;;  %v1378_v38 = vsub.f32 %v4653_v25, %v5623_v24  ;;  %v5627_v27 = vand.u32 4294901760, %v4674_v10  ;;  %v4689_v7 = vsub.f32 %v4563_v29, %v4592_v49 }
 0x147   : > { %5693 = vst [vmem:[#allocation38_spill] sm:$0xff] %v4677_v62  ;;  %1362 = vmatpush1.msra.mxu1 %v1361_v4  ;;  %v1178_v22 = vsub.f32 %v4660_v28, %v4677_v62  ;;  %v1373_v16 = vand.u32 4294901760, %v1372_v31  ;;  %v1384_v15 = vsub.f32 %v4665_v47, %v5626_v33  ;;  %v4698_v26 = vsub.f32 %v4575_v34, %v4607_v19  ;;  %v1010_v31 = vld [vmem:[#allocation2] sm:$0xff] }
 0x148   : > { %1368 = vmatprep.subr.mxu1 %v1367_v6  ;;  %v1379_v11 = vand.u32 4294901760, %v1378_v38  ;;  %v1390_v29 = vsub.f32 %v4674_v10, %v5627_v27  ;;  %v5628_v4 = vand.u32 4294901760, %v4689_v7  ;;  %v4706_v24 = vsub.f32 %v4599_v40, %v4623_v8 }
 0x149   : > { %5695 = vst [vmem:[#allocation39_spill] sm:$0xff] %v4698_v26  ;;  %v4708_v62 = vand.u32 4294901760, %v1178_v22  ;;  %1374 = vmatpush1.msra.mxu1 %v1373_v16  ;;  %v1385_v33 = vand.u32 4294901760, %v1384_v15  ;;  %v5630_v34 = vand.u32 4294901760, %v4698_v26  ;;  %v4719_v22 = vand.u32 4294901760, %v1010_v31 }
 0x14a   : > { %5696 = vst [vmem:[#allocation40_spill] sm:$0xff] %v4706_v24  ;;  %1380 = vmatprep.subr.mxu1 %v1379_v11  ;;  %v1391_v6 = vand.u32 4294901760, %v1390_v29  ;;  %v1396_v38 = vsub.f32 %v4689_v7, %v5628_v4  ;;  %v5629_v27 = vand.u32 4294901760, %v4706_v24  ;;  %v1011_v11 = vld [vmem:[#allocation2 + $0x18] sm:$0xff]  ;;  %v5699_v4 = vmov 0.0  }
 0x14b   : > { %5697 = vst [vmem:[#allocation41_spill] sm:$0xff] %v4708_v62  ;;  %1180 = vmatmul.mubr.f32.vlgmr.msra.gmra.mxu0 %v4708_v62  ;;  %1386 = vmatpush1.msra.mxu1 %v1385_v33  ;;  %v1402_v40 = vsub.f32 %v4698_v26, %v5630_v34  ;;  %5698 = vst [vmem:[#allocation42_spill] sm:$0xff] %v4719_v22 }
 0x14c   : > { %1477 = vmatpush1.msra.mxu0 %v4309_v1  ;;  %1392 = vmatprep.subr.mxu1 %v1391_v6  ;;  %v1397_v16 = vand.u32 4294901760, %v1396_v38  ;;  %v1408_v15 = vsub.f32 %v4706_v24, %v5629_v27  ;;  %v4730_v6 = vsub.f32 %v1010_v31, %v4719_v22  ;;  %v4732_v38 = vand.u32 4294901760, %v1011_v11 }
 0x14d   : > { %1480 = vmatprep.subr.mxu0 %v4315_v3  ;;  %v1403_v29 = vand.u32 4294901760, %v1402_v40  ;;  %1185 = vmatprep.mubr.f32.mxu0 %v5699_v4  ;;  %v1012_v40 = vld [vmem:[#allocation2 + $0x8] sm:$0xff] }
 0x14e   : > { %1483 = vmatpush1.msra.mxu0 %v4332_v9  ;;  %1398 = vmatpush1.msra.mxu1 %v1397_v16  ;;  %v1409_v33 = vand.u32 4294901760, %v1408_v15  ;;  %5700 = vst [vmem:[#allocation43_spill] sm:$0xff] %v4732_v38  ;;  %v4742_v31 = vand.u32 4294901760, %v4730_v6  ;;  %v4745_v16 = vsub.f32 %v1011_v11, %v4732_v38  ;;  %v4751_v15 = vand.u32 4294901760, %v1012_v40 }
 0x14f   : > { %1486 = vmatprep.subr.mxu0 %v4341_v13  ;;  %1404 = vmatprep.subr.mxu1 %v1403_v29 }
 0x150   : > { %1489 = vmatpush1.msra.mxu0 %v4355_v18  ;;  %1410 = vmatpush1.msra.mxu1 %v1409_v33  ;;  %v1189_v11 = vsub.f32 %v4730_v6, %v4742_v31  ;;  %v4760_v29 = vand.u32 4294901760, %v4745_v16  ;;  %v4767_v33 = vsub.f32 %v1012_v40, %v4751_v15  ;;  %v5702_v40 = vld [vmem:[#allocation18_spill] sm:$0xff] }
 0x151   : > { %1492 = vmatprep.subr.mxu0 %v4369_v23  ;;  %1445 = vmatmul.mubr.f32.vlgmr.msra.gmra.mxu1 %v4640_v14  ;;  %v5703_v14 = vld [vmem:[#allocation19_spill] sm:$0xff] }
 0x152   : > { %1495 = vmatpush1.msra.mxu0 %v4398_v37  ;;  %1634 = vmatprep.subr.mxu1 %v4265_v44  ;;  %v4773_v27 = vand.u32 4294901760, %v1189_v11  ;;  %v1200_v34 = vsub.f32 %v4745_v16, %v4760_v29  ;;  %v4782_v62 = vand.u32 4294901760, %v4767_v33 }
 0x153   : > { %1498 = vmatprep.subr.mxu0 %v4411_v42  ;;  %1636 = vmatpush1.msra.mxu1 %v4267_v45 }
 0x154   : > { %1501 = vmatpush1.msra.mxu0 %v4423_v54  ;;  %1638 = vmatprep.subr.mxu1 %v4269_v46  ;;  %5701 = vst [vmem:[#allocation44_spill] sm:$0xff] %v4773_v27  ;;  %v4788_v11 = vand.u32 4294901760, %v1200_v34  ;;  %v5708_v34 = vld [vmem:[#allocation23_spill] sm:$0xff] }
 0x155   : > { %1504 = vmatprep.subr.mxu0 %v4435_v21  ;;  %1640 = vmatpush1.msra.mxu1 %v4276_v51 }
 0x156   : > { %1507 = vmatpush1.msra.mxu0 %v4447_v30  ;;  %1642 = vmatprep.subr.mxu1 %v4278_v52  ;;  %5704 = vst [vmem:[#allocation19_spill] sm:$0xff] %v4788_v11 }
 0x157   : > { %1510 = vmatprep.subr.mxu0 %v4462_v36  ;;  %1644 = vmatpush1.msra.mxu1 %v4280_v53 }
 0x158   : > { %1513 = vmatpush1.msra.mxu0 %v4474_v20  ;;  %1646 = vmatprep.subr.mxu1 %v4286_v57 }
 0x159   : > { %1516 = vmatprep.subr.mxu0 %v4497_v35  ;;  %1648 = vmatpush1.msra.mxu1 %v4288_v58 }
 0x15a   : > { %1519 = vmatpush1.msra.mxu0 %v4511_v48  ;;  %1650 = vmatprep.subr.mxu1 %v4290_v59 }
 0x15b   : > { %1522 = vmatprep.subr.mxu0 %v4531_v32  ;;  %1652 = vmatpush1.msra.mxu1 %v4306_v0 }
 0x15c   : > { %1525 = vmatpush1.msra.mxu0 %v4545_v41  ;;  %1654 = vmatprep.subr.mxu1 %v4312_v2  ;;  %v5705_v2 = vld [vmem:[#allocation20_spill] sm:$0xff] }
 0x15d   : > { %1528 = vmatprep.subr.mxu0 %v4557_v61  ;;  %1656 = vmatpush1.msra.mxu1 %v5702_v40  ;;  %v5706_v40 = vld [vmem:[#allocation21_spill] sm:$0xff]  ;;  %v1211_v61 = vsub.f32 %v4767_v33, %v4782_v62 }
 0x15e   : > { %1531 = vmatpush1.msra.mxu0 %v4569_v5  ;;  %1658 = vmatprep.subr.mxu1 %v5703_v14 }
 0x15f   : > { %1191 = vmatmul.mubr.f32.gmra.mxu0 %v4773_v27  ;;  %1534 = vmatprep.subr.mxu0 %v4584_v43  ;;  %v5707_v27 = vld [vmem:[#allocation22_spill] sm:$0xff] }
 0x160   : > { %1537 = vmatpush1.msra.mxu0 %v4596_v50  ;;  %1660 = vmatpush1.msra.mxu1 %v5705_v2  ;;  %v5711_v2 = vld [vmem:[#allocation25_spill] sm:$0xff] }
 0x161   : > { %1540 = vmatprep.subr.mxu0 %v4616_v55  ;;  %1662 = vmatprep.subr.mxu1 %v5706_v40  ;;  %v5709_v55 = vld [vmem:[#allocation24_spill] sm:$0xff]  ;;  %v4804_v40 = vand.u32 4294901760, %v1211_v61  ;;  %v5713_v61 = vld [vmem:[#allocation27_spill] sm:$0xff] }
 0x162   : > { %1196 = vmatprep.mubr.f32.mxu0 %v5699_v4  ;;  %1543 = vmatpush1.msra.mxu0 %v4627_v56 }
 0x163   : > { %1664 = vmatpush1.msra.mxu1 %v5707_v27  ;;  %1202 = vmatmul.mubr.f32.gmra.mxu0 %v4788_v11  ;;  %5710 = vst [vmem:[#allocation22_spill] sm:$0xff] %v4804_v40  ;;  %v5712_v11 = vld [vmem:[#allocation26_spill] sm:$0xff] }
 0x164   : > { %1546 = vmatprep.subr.mxu0 %v4636_v39  ;;  %1666 = vmatprep.subr.mxu1 %v5708_v34 }
 0x165   : > { %1549 = vmatpush1.msra.mxu0 %v4644_v63  ;;  %1668 = vmatpush1.msra.mxu1 %v5709_v55  ;;  %v5714_v55 = vld [vmem:[#allocation28_spill] sm:$0xff] }
 0x166   : > { %1450 = vmatprep.mubr.f32.mxu1 %v5699_v4  ;;  %1552 = vmatprep.subr.mxu0 %v4653_v25 }
 0x167   : > { %1670 = vmatprep.subr.mxu1 %v5711_v2  ;;  %1207 = vmatprep.mubr.f32.mxu0 %v5699_v4  ;;  %v5715_v2 = vld [vmem:[#allocation29_spill] sm:$0xff] }
 0x168   : > { %1452 = vmatmul.mubr.f32.gmra.mxu1 %v4719_v22  ;;  %1555 = vmatpush1.msra.mxu0 %v4665_v47  ;;  %v5717_v22 = vld [vmem:[#allocation30_spill] sm:$0xff] }
 0x169   : > { %1672 = vmatpush1.msra.mxu1 %v5712_v11  ;;  %1213 = vmatmul.mubr.f32.gmra.mxu0 %v4804_v40  ;;  %v5716_v40 = vand.u32 4294901760, %v4293_v60  ;;  %v5722_v60 = vand.u32 4294901760, %v4332_v9  ;;  %v5727_v9 = vand.u32 4294901760, %v4398_v37  ;;  %v5732_v37 = vand.u32 4294901760, %v4447_v30  ;;  %v1060_v30 = vld [vmem:[%s4121_s30 + $0x178] sm:$0xff] }
 0x16a   : > { %1558 = vmatprep.subr.mxu0 %v4674_v10  ;;  %1674 = vmatprep.subr.mxu1 %v5713_v61 }
 0x16b   : > { %1561 = vmatpush1.msra.mxu0 %v4689_v7  ;;  %1676 = vmatpush1.msra.mxu1 %v5714_v55 }
 0x16c   : > { %1457 = vmatprep.mubr.f32.mxu1 %v5699_v4  ;;  %1564 = vmatprep.subr.mxu0 %v4698_v26  ;;  %v5718_v26 = vand.u32 4294901760, %v4309_v1  ;;  %v5724_v1 = vand.u32 4294901760, %v4341_v13  ;;  %v5728_v13 = vld [vmem:[#allocation38_spill] sm:$0xff] }
 0x16d   : > { %1678 = vmatprep.subr.mxu1 %v5715_v2  ;;  %1459 = vmatmul.mubr.f32.gmra.mxu1 %v4732_v38  ;;  %v5719_v38 = vld [vmem:[#allocation31_spill] sm:$0xff] }
 0x16e   : > { %1567 = vmatpush1.msra.mxu0 %v4706_v24  ;;  %1600 = vmatprep.mubr.f32.mxu0 %v5699_v4  ;;  %v5720_v24 = vand.u32 4294901760, %v4315_v3  ;;  %v5725_v3 = vand.u32 4294901760, %v4355_v18  ;;  %v5729_v18 = vand.u32 4294901760, %v4411_v42  ;;  %v5737_v42 = vand.u32 4294901760, %v4531_v32 }
 0x16f   : > { %1680 = vmatpush1.msra.mxu1 %v4507_v17  ;;  %1603 = vmatmul.mubr.f32.vlgmr.msra.gmra.mxu0 %v4660_v28  ;;  %v5721_v28 = vld [vmem:[#allocation33_spill] sm:$0xff]  ;;  %v5751_v32 = vand.u32 4294901760, %v4636_v39  ;;  %v5756_v39 = vand.u32 4294901760, %v4665_v47  ;;  %v5759_v47 = vld [vmem:[#allocation39_spill] sm:$0xff] }
 0x170   : > { %1682 = vmatprep.subr.mxu1 %v4522_v12  ;;  %1769 = vmatprep.subr.mxu0 %v5716_v40  ;;  %v5723_v40 = vld [vmem:[#allocation34_spill] sm:$0xff] }
 0x171   : > { %1684 = vmatpush1.msra.mxu1 %v5717_v22  ;;  %1773 = vmatpush1.msra.mxu0 %v5718_v26  ;;  %v5731_v26 = vand.u32 4294901760, %v4435_v21  ;;  %v5746_v21 = vld [vmem:[#allocation20_spill] sm:$0xff] }
 0x172   : > { %1464 = vmatprep.mubr.f32.mxu1 %v5699_v4  ;;  %1686 = vmatprep.subr.mxu1 %v5719_v38 }
 0x173   : > { %1777 = vmatprep.subr.mxu0 %v5720_v24  ;;  %1466 = vmatmul.mubr.f32.gmra.mxu1 %v4751_v15  ;;  %v5726_v24 = vand.u32 4294901760, %v4369_v23  ;;  %v5730_v23 = vand.u32 4294901760, %v4423_v54  ;;  %v5741_v54 = vld [vmem:[#allocation17_spill] sm:$0xff] }
 0x174   : > { %1608 = vmatprep.mubr.f32.mxu0 %v5699_v4  ;;  %1688 = vmatpush1.msra.mxu1 %v5721_v28 }
 0x175   : > { %1781 = vmatpush1.msra.mxu0 %v5722_v60  ;;  %1690 = vmatprep.subr.mxu1 %v5723_v40  ;;  %v5754_v60 = vand.u32 4294901760, %v4653_v25  ;;  %v5758_v25 = vand.u32 4294901760, %v4689_v7 }
 0x176   : > { %1611 = vmatmul.mubr.f32.gmra.mxu0 %v4730_v6  ;;  %1785 = vmatprep.subr.mxu0 %v5724_v1  ;;  %v5757_v1 = vand.u32 4294901760, %v4674_v10 }
 0x177   : > { %1692 = vmatpush1.msra.mxu1 %v4592_v49  ;;  %1789 = vmatpush1.msra.mxu0 %v5725_v3  ;;  %v1051_v3 = vld [vmem:[%s4121_s30 + $0x130] sm:$0xff] }
 0x178   : > { %1694 = vmatprep.subr.mxu1 %v4607_v19  ;;  %1793 = vmatprep.subr.mxu0 %v5726_v24  ;;  %v5760_v24 = vand.u32 4294901760, %v5759_v47  ;;  %v4956_v7 = vand.u32 4294901760, %v1051_v3 }
 0x179   : > { %1616 = vmatprep.mubr.f32.mxu0 %v5699_v4  ;;  %1696 = vmatpush1.msra.mxu1 %v4623_v8 }
 0x17a   : > { %1729 = vmatprep.mubr.f32.mxu1 %v5699_v4  ;;  %1797 = vmatpush1.msra.mxu0 %v5727_v9 }
 0x17b   : > { %1619 = vmatmul.mubr.f32.gmra.mxu0 %v4745_v16  ;;  %1733 = vmatmul.mubr.f32.vlgmr.msra.gmra.mxu1 %v5728_v13 }
 0x17c   : > { %1801 = vmatprep.subr.mxu0 %v5729_v18  ;;  %1956 = vmatprep.subr.mxu1 %v4265_v44  ;;  %v5733_v44 = vand.u32 4294901760, %v4462_v36  ;;  %v1048_v18 = vld [vmem:[%s4121_s30 + $0x118] sm:$0xff] }
 0x17d   : > { %1805 = vmatpush1.msra.mxu0 %v5730_v23  ;;  %1958 = vmatpush1.msra.mxu1 %v4267_v45  ;;  %v5734_v45 = vand.u32 4294901760, %v4474_v20  ;;  %v5743_v20 = vld [vmem:[#allocation18_spill] sm:$0xff] }
 0x17e   : > { %1809 = vmatprep.subr.mxu0 %v5731_v26  ;;  %1960 = vmatprep.subr.mxu1 %v4269_v46  ;;  %v5735_v46 = vand.u32 4294901760, %v4497_v35  ;;  %v5747_v35 = vld [vmem:[#allocation35_spill] sm:$0xff] }
 0x17f   : > { %1624 = vmatprep.mubr.f32.mxu0 %v5699_v4  ;;  %1738 = vmatprep.mubr.f32.mxu1 %v5699_v4  ;;  %v5748_v36 = vand.u32 4294901760, %v5747_v35 }
 0x180   : > { %1813 = vmatpush1.msra.mxu0 %v5732_v37  ;;  %1962 = vmatpush1.msra.mxu1 %v4276_v51  ;;  %v5736_v51 = vand.u32 4294901760, %v4511_v48  ;;  %v5749_v48 = vld [vmem:[#allocation21_spill] sm:$0xff]  ;;  %v4982_v37 = vsub.f32 %v1051_v3, %v4956_v7 }
 0x181   : > { %1627 = vmatmul.mubr.f32.gmra.mxu0 %v4767_v33  ;;  %1742 = vmatmul.mubr.f32.gmra.mxu1 %v4742_v31 }
 0x182   : > { %1817 = vmatprep.subr.mxu0 %v5733_v44  ;;  %1964 = vmatprep.subr.mxu1 %v4278_v52  ;;  %v5738_v52 = vand.u32 4294901760, %v4545_v41  ;;  %v4919_v41 = vand.u32 4294901760, %v1060_v30  ;;  %v1042_v44 = vld [vmem:[%s4121_s30 + $0xe8] sm:$0xff] }
 0x183   : > { %1821 = vmatpush1.msra.mxu0 %v5734_v45  ;;  %1966 = vmatpush1.msra.mxu1 %v4280_v53  ;;  %v5739_v53 = vld [vmem:[#allocation32_spill] sm:$0xff]  ;;  %v5764_v45 = vld [vmem:[#allocation42_spill] sm:$0xff] }
 0x184   : > { %1825 = vmatprep.subr.mxu0 %v5735_v46  ;;  %1968 = vmatprep.subr.mxu1 %v4286_v57  ;;  %v5740_v57 = vand.u32 4294901760, %v5739_v53  ;;  %v5007_v53 = vand.u32 4294901760, %v4982_v37 }
 0x185   : > { %1747 = vmatprep.mubr.f32.mxu1 %v5699_v4  ;;  %1829 = vmatpush1.msra.mxu0 %v5736_v51  ;;  %v1039_v51 = vld [vmem:[%s4121_s30 + $0xd0] sm:$0xff] }
 0x186   : > { %1970 = vmatpush1.msra.mxu1 %v4288_v58  ;;  %1833 = vmatprep.subr.mxu0 %v5737_v42  ;;  %v5742_v58 = vand.u32 4294901760, %v4569_v5  ;;  %v5750_v5 = vand.u32 4294901760, %v4627_v56  ;;  %v5755_v56 = vld [vmem:[#allocation25_spill] sm:$0xff] }
 0x187   : > { %1751 = vmatmul.mubr.f32.gmra.mxu1 %v4760_v29  ;;  %1972 = vmatprep.subr.mxu1 %v4290_v59  ;;  %v5744_v59 = vand.u32 4294901760, %v4584_v43  ;;  %v1057_v43 = vld [vmem:[%s4121_s30 + $0x160] sm:$0xff] }
 0x188   : > { %1837 = vmatpush1.msra.mxu0 %v5738_v52  ;;  %1974 = vmatpush1.msra.mxu1 %v4306_v0  ;;  %v5745_v0 = vand.u32 4294901760, %v4596_v50  ;;  %v5752_v50 = vand.u32 4294901760, %v4644_v63  ;;  %v4937_v63 = vsub.f32 %v1060_v30, %v4919_v41  ;;  %v5004_v52 = vand.u32 4294901760, %v1042_v44 }
 0x189   : > { %1841 = vmatprep.subr.mxu0 %v5740_v57  ;;  %1976 = vmatprep.subr.mxu1 %v5741_v54 }
 0x18a   : > { %1756 = vmatprep.mubr.f32.mxu1 %v5699_v4  ;;  %1845 = vmatpush1.msra.mxu0 %v5742_v58  ;;  %v4960_v23 = vand.u32 4294901760, %v4937_v63  ;;  %v5019_v58 = vand.u32 4294901760, %v1039_v51  ;;  %v5033_v30 = vsub.f32 %v1042_v44, %v5004_v52 }
 0x18b   : > { %1978 = vmatpush1.msra.mxu1 %v5743_v20  ;;  %1849 = vmatprep.subr.mxu0 %v5744_v59  ;;  %v5765_v20 = vld [vmem:[#allocation43_spill] sm:$0xff]  ;;  %v1033_v59 = vld [vmem:[%s4121_s30 + $0xa0] sm:$0xff] }
 0x18c   : > { %1760 = vmatmul.mubr.f32.gmra.mxu1 %v4782_v62  ;;  %1980 = vmatprep.subr.mxu1 %v5703_v14  ;;  %v5753_v14 = vld [vmem:[#allocation24_spill] sm:$0xff] }
 0x18d   : > { %1853 = vmatpush1.msra.mxu0 %v5745_v0  ;;  %1982 = vmatpush1.msra.mxu1 %v5746_v21  ;;  %v2226_v0 = vsub.f32 %v4982_v37, %v5007_v53 }
 0x18e   : > { %1857 = vmatprep.subr.mxu0 %v5748_v36  ;;  %1984 = vmatprep.subr.mxu1 %v5749_v48  ;;  %v1030_v36 = vld [vmem:[%s4121_s30 + $0x88] sm:$0xff] }
 0x18f   : > { %1861 = vmatpush1.msra.mxu0 %v5750_v5  ;;  %1986 = vmatpush1.msra.mxu1 %v5707_v27  ;;  %v4927_v27 = vand.u32 4294901760, %v1057_v43  ;;  %v5041_v5 = vand.u32 4294901760, %v1033_v59 }
 0x190   : > { %1865 = vmatprep.subr.mxu0 %v5751_v32  ;;  %1988 = vmatprep.subr.mxu1 %v5708_v34  ;;  %v1054_v34 = vld [vmem:[%s4121_s30 + $0x148] sm:$0xff] }
 0x191   : > { %1869 = vmatpush1.msra.mxu0 %v5752_v50  ;;  %1990 = vmatpush1.msra.mxu1 %v5753_v14  ;;  %v4946_v10 = vand.u32 4294901760, %v1054_v34  ;;  %v1027_v50 = vld [vmem:[%s4121_s30 + $0x70] sm:$0xff]  ;;  %v2227_v14 = vand.u32 4294901760, %v2226_v0  ;;  %v5072_v47 = vsub.f32 %v1033_v59, %v5041_v5 }
 0x192   : > { %1873 = vmatprep.subr.mxu0 %v5754_v60  ;;  %1992 = vmatprep.subr.mxu1 %v5755_v56  ;;  %v5052_v60 = vand.u32 4294901760, %v1030_v36  ;;  %v5055_v56 = vand.u32 4294901760, %v5033_v30 }
 0x193   : > { %1877 = vmatpush1.msra.mxu0 %v5756_v39  ;;  %1994 = vmatpush1.msra.mxu1 %v5712_v11  ;;  %v4949_v11 = vsub.f32 %v1057_v43, %v4927_v27  ;;  %v4971_v26 = vsub.f32 %v1054_v34, %v4946_v10  ;;  %v5044_v43 = vsub.f32 %v1039_v51, %v5019_v58  ;;  %v5093_v51 = vand.u32 4294901760, %v5072_v47 }
 0x194   : > { %1881 = vmatprep.subr.mxu0 %v5757_v1  ;;  %1996 = vmatprep.subr.mxu1 %v5713_v61  ;;  %v5761_v61 = vld [vmem:[#allocation40_spill] sm:$0xff] }
 0x195   : > { %1885 = vmatpush1.msra.mxu0 %v5758_v25  ;;  %1998 = vmatpush1.msra.mxu1 %v5714_v55  ;;  %v5762_v9 = vand.u32 4294901760, %v5761_v61  ;;  %v5763_v55 = vld [vmem:[#allocation36_spill] sm:$0xff]  ;;  %v4994_v46 = vand.u32 4294901760, %v4971_v26  ;;  %v5066_v25 = vand.u32 4294901760, %v1027_v50  ;;  %v5069_v3 = vand.u32 4294901760, %v5044_v43  ;;  %5766 = vst [vmem:[#allocation23_spill] sm:$0xff] %v5093_v51 }
 0x196   : > { %1889 = vmatprep.subr.mxu0 %v5760_v24  ;;  %2000 = vmatprep.subr.mxu1 %v5715_v2  ;;  %v1045_v2 = vld [vmem:[%s4121_s30 + $0x100] sm:$0xff]  ;;  %v1024_v1 = vld [vmem:[%s4121_s30 + $0x58] sm:$0xff]  ;;  %v2247_v61 = vsub.f32 %v5033_v30, %v5055_v56 }
 0x197   : > { %1893 = vmatpush1.msra.mxu0 %v5762_v9  ;;  %1926 = vmatprep.mubr.f32.mxu0 %v5699_v4  ;;  %v2219_v54 = vsub.f32 %v4971_v26, %v4994_v46  ;;  %v5078_v9 = vand.u32 4294901760, %v1024_v1 }
 0x198   : > { %2002 = vmatpush1.msra.mxu1 %v4507_v17  ;;  %1928 = vmatmul.mubr.f32.vlgmr.msra.gmra.mxu0 %v5763_v55  ;;  %v4968_v17 = vand.u32 4294901760, %v4949_v11 }
 0x199   : > { %2004 = vmatprep.subr.mxu1 %v4522_v12  ;;  %3490 = vmatprep.subr.mxu0 %v4919_v41  ;;  %v4975_v12 = vand.u32 4294901760, %v1048_v18  ;;  %v2220_v48 = vand.u32 4294901760, %v2219_v54  ;;  %v2248_v54 = vand.u32 4294901760, %v2247_v61 }
 0x19a   : > { %2006 = vmatpush1.msra.mxu1 %v5717_v22  ;;  %3491 = vmatpush3.msra.mxu0 %v4919_v41  ;;  %v2205_v22 = vsub.f32 %v4937_v63, %v4960_v23 }
 0x19b   : > { %2008 = vmatprep.subr.mxu1 %v5719_v38  ;;  %3492 = vmatprep.subr.mxu0 %v4927_v27  ;;  %v4986_v38 = vand.u32 4294901760, %v1045_v2 }
 0x19c   : > { %1933 = vmatprep.mubr.f32.mxu0 %v5699_v4  ;;  %2010 = vmatpush1.msra.mxu1 %v5721_v28  ;;  %v2212_v28 = vsub.f32 %v4949_v11, %v4968_v17  ;;  %v2206_v42 = vand.u32 4294901760, %v2205_v22  ;;  %v5085_v22 = vsub.f32 %v1030_v36, %v5052_v60  ;;  %v1015_v36 = vld [vmem:[%s4121_s30 + $0x10] sm:$0xff] }
 0x19d   : > { %3493 = vmatpush3.msra.mxu0 %v4927_v27  ;;  %2012 = vmatprep.subr.mxu1 %v5723_v40  ;;  %v5000_v40 = vsub.f32 %v1048_v18, %v4975_v12  ;;  %v5013_v57 = vsub.f32 %v1045_v2, %v4986_v38  ;;  %v1021_v2 = vld [vmem:[%s4121_s30 + $0x40] sm:$0xff] }
 0x19e   : > { %1935 = vmatmul.mubr.f32.gmra.mxu0 %v5764_v45  ;;  %3494 = vmatprep.subr.mxu0 %v4946_v10  ;;  %v5106_v0 = vand.u32 4294901760, %v5085_v22 }
 0x19f   : > { %2014 = vmatpush1.msra.mxu1 %v4592_v49  ;;  %3495 = vmatpush3.msra.mxu0 %v4946_v10  ;;  %v1036_v49 = vld [vmem:[%s4121_s30 + $0xb8] sm:$0xff]  ;;  %v5037_v35 = vand.u32 4294901760, %v5013_v57 }
 0x1a0   : > { %2016 = vmatprep.subr.mxu1 %v4607_v19  ;;  %3496 = vmatprep.subr.mxu0 %v4956_v7  ;;  %v2213_v19 = vand.u32 4294901760, %v2212_v28  ;;  %v5030_v21 = vand.u32 4294901760, %v1036_v49  ;;  %v2254_v28 = vsub.f32 %v5044_v43, %v5069_v3  ;;  %5767 = vst [vmem:[#allocation26_spill] sm:$0xff] %v5106_v0  ;;  %v2275_v61 = vsub.f32 %v5085_v22, %v5106_v0 }
 0x1a1   : > { %1940 = vmatprep.mubr.f32.mxu0 %v5699_v4  ;;  %2018 = vmatpush1.msra.mxu1 %v4623_v8  ;;  %v5024_v8 = vand.u32 4294901760, %v5000_v40  ;;  %v2240_v34 = vsub.f32 %v5013_v57, %v5037_v35 }
 0x1a2   : > { %2051 = vmatprep.mubr.f32.mxu1 %v5699_v4  ;;  %3497 = vmatpush3.msra.mxu0 %v4956_v7  ;;  %v5058_v39 = vsub.f32 %v1036_v49, %v5030_v21  ;;  %v5097_v49 = vsub.f32 %v1027_v50, %v5066_v25  ;;  %v2255_v50 = vand.u32 4294901760, %v2254_v28 }
 0x1a3   : > { %1942 = vmatmul.mubr.f32.gmra.mxu0 %v5765_v20  ;;  %2053 = vmatmul.mubr.f32.vlgmr.msra.gmra.mxu1 %v5763_v55  ;;  %v2233_v32 = vsub.f32 %v5000_v40, %v5024_v8  ;;  %v2241_v44 = vand.u32 4294901760, %v2240_v34 }
 0x1a4   : > { %3498 = vmatprep.subr.mxu0 %v4975_v12  ;;  %3528 = vmatprep.subr.mxu1 %v2206_v42  ;;  %v5081_v18 = vand.u32 4294901760, %v5058_v39  ;;  %v5120_v34 = vand.u32 4294901760, %v5097_v49 }
 0x1a5   : > { %3499 = vmatpush3.msra.mxu0 %v4975_v12  ;;  %3529 = vmatpush3.msra.mxu1 %v2206_v42  ;;  %v2234_v24 = vand.u32 4294901760, %v2233_v32  ;;  %v1018_v42 = vld [vmem:[%s4121_s30 + $0x28] sm:$0xff]  ;;  %s3235_s30 = sshll.u32 %s3973_s28, 3 }
 0x1a6   : > { %3500 = vmatprep.subr.mxu0 %v4986_v38  ;;  %3530 = vmatprep.subr.mxu1 %v2213_v19  ;;  %v2261_v59 = vsub.f32 %v5058_v39, %v5081_v18  ;;  %v5113_v32 = vand.u32 4294901760, %v1018_v42 }
 0x1a7   : > { %1947 = vmatprep.mubr.f32.mxu0 %v5699_v4  ;;  %2058 = vmatprep.mubr.f32.mxu1 %v5699_v4 }
 0x1a8   : > { %3501 = vmatpush3.msra.mxu0 %v4986_v38  ;;  %3531 = vmatpush3.msra.mxu1 %v2213_v19  ;;  %v5100_v19 = vand.u32 4294901760, %v1021_v2 }
 0x1a9   : > { %1949 = vmatmul.mubr.f32.gmra.mxu0 %v4751_v15  ;;  %2060 = vmatmul.mubr.f32.gmra.mxu1 %v5764_v45 }
 0x1aa   : > { %3502 = vmatprep.subr.mxu0 %v5004_v52  ;;  %3532 = vmatprep.subr.mxu1 %v2220_v48 }
 0x1ab   : > { %3503 = vmatpush3.msra.mxu0 %v5004_v52  ;;  %3533 = vmatpush3.msra.mxu1 %v2220_v48  ;;  %v5110_v48 = vsub.f32 %v1024_v1, %v5078_v9  ;;  %v5123_v1 = vand.u32 4294901760, %v1015_v36 }
 0x1ac   : > { %3504 = vmatprep.subr.mxu0 %v5019_v58  ;;  %3534 = vmatprep.subr.mxu1 %v2227_v14 }
 0x1ad   : > { %2065 = vmatprep.mubr.f32.mxu1 %v5699_v4  ;;  %3505 = vmatpush3.msra.mxu0 %v5019_v58  ;;  %v5132_v28 = vand.u32 4294901760, %v5110_v48  ;;  %v5146_v0 = vsub.f32 %v1015_v36, %v5123_v1 }
 0x1ae   : > { %3535 = vmatpush3.msra.mxu1 %v2227_v14  ;;  %3506 = vmatprep.subr.mxu0 %v5030_v21  ;;  %v2268_v14 = vsub.f32 %v5072_v47, %v5093_v51  ;;  %v2282_v51 = vsub.f32 %v5097_v49, %v5120_v34 }
 0x1af   : > { %2067 = vmatmul.mubr.f32.gmra.mxu1 %v5765_v20  ;;  %3536 = vmatprep.subr.mxu1 %v2234_v24  ;;  %5768 = vst [vmem:[#allocation27_spill] sm:$0xff] %v5132_v28 }
 0x1b0   : > { %3507 = vmatpush3.msra.mxu0 %v5030_v21  ;;  %3537 = vmatpush3.msra.mxu1 %v2234_v24  ;;  %v5126_v24 = vsub.f32 %v1021_v2, %v5100_v19  ;;  %v2269_v2 = vand.u32 4294901760, %v2268_v14 }
 0x1b1   : > { %3508 = vmatprep.subr.mxu0 %v5041_v5  ;;  %3538 = vmatprep.subr.mxu1 %v2241_v44 }
 0x1b2   : > { %2072 = vmatprep.mubr.f32.mxu1 %v5699_v4  ;;  %3509 = vmatpush3.msra.mxu0 %v5041_v5  ;;  %v2262_v4 = vand.u32 4294901760, %v2261_v59  ;;  %v5143_v59 = vand.u32 4294901760, %v5126_v24 }
 0x1b3   : > { %3539 = vmatpush3.msra.mxu1 %v2241_v44  ;;  %3510 = vmatprep.subr.mxu0 %v5052_v60  ;;  %v5136_v44 = vsub.f32 %v1018_v42, %v5113_v32  ;;  %v2276_v42 = vand.u32 4294901760, %v2275_v61  ;;  %v5160_v61 = vand.u32 4294901760, %v5146_v0 }
 0x1b4   : > { %2074 = vmatmul.mubr.f32.gmra.mxu1 %v4751_v15  ;;  %3540 = vmatprep.subr.mxu1 %v2248_v54  ;;  %5769 = vst [vmem:[#allocation28_spill] sm:$0xff] %v5143_v59  ;;  %v2296_v36 = vsub.f32 %v5126_v24, %v5143_v59  ;;  %v5771_v59 = vld [vmem:[#allocation41_spill] sm:$0xff] }
 0x1b5   : > { %3511 = vmatpush3.msra.mxu0 %v5052_v60  ;;  %3541 = vmatpush3.msra.mxu1 %v2248_v54  ;;  %v2289_v54 = vsub.f32 %v5110_v48, %v5132_v28  ;;  %v5153_v14 = vand.u32 4294901760, %v5136_v44 }
 0x1b6   : > { %3512 = vmatprep.subr.mxu0 %v5066_v25  ;;  %3542 = vmatprep.subr.mxu1 %v2255_v50 }
 0x1b7   : > { %3513 = vmatpush3.msra.mxu0 %v5066_v25  ;;  %3543 = vmatpush3.msra.mxu1 %v2255_v50  ;;  %5770 = vst [vmem:[#allocation29_spill] sm:$0xff] %v5153_v14  ;;  %v2283_v50 = vand.u32 4294901760, %v2282_v51  ;;  %v2303_v28 = vsub.f32 %v5136_v44, %v5153_v14  ;;  %v2297_v51 = vand.u32 4294901760, %v2296_v36 }
 0x1b8   : > { %3514 = vmatprep.subr.mxu0 %v5078_v9  ;;  %3544 = vmatprep.subr.mxu1 %v2262_v4 }
 0x1b9   : > { %3515 = vmatpush3.msra.mxu0 %v5078_v9  ;;  %3545 = vmatpush3.msra.mxu1 %v2262_v4  ;;  %v2290_v4 = vand.u32 4294901760, %v2289_v54  ;;  %v5772_v54 = vld [vmem:[#allocation44_spill] sm:$0xff] }
 0x1ba   : > { %3516 = vmatprep.subr.mxu0 %v5100_v19  ;;  %3546 = vmatprep.subr.mxu1 %v2269_v2 }
 0x1bb   : > { %3517 = vmatpush3.msra.mxu0 %v5100_v19  ;;  %3547 = vmatpush3.msra.mxu1 %v2269_v2  ;;  %v2310_v2 = vsub.f32 %v5146_v0, %v5160_v61 }
 0x1bc   : > { %3518 = vmatprep.subr.mxu0 %v5113_v32  ;;  %3548 = vmatprep.subr.mxu1 %v2276_v42 }
 0x1bd   : > { %3519 = vmatpush3.msra.mxu0 %v5113_v32  ;;  %3549 = vmatpush3.msra.mxu1 %v2276_v42  ;;  %v2304_v42 = vand.u32 4294901760, %v2303_v28  ;;  %v2311_v14 = vand.u32 4294901760, %v2310_v2 }
 0x1be   : > { %3520 = vmatprep.subr.mxu0 %v5123_v1  ;;  %3550 = vmatprep.subr.mxu1 %v2283_v50 }
 0x1bf   : > { %3521 = vmatpush3.msra.mxu0 %v5123_v1  ;;  %3551 = vmatpush3.msra.mxu1 %v2283_v50 }
 0x1c0   : > { %3522 = vmatprep.mubr.f32.mxu0 %v5771_v59  ;;  %3552 = vmatprep.subr.mxu1 %v2290_v4 }
 0x1c1   : > { %3566 = vmatprep.subr.mxu0 %v4937_v63  ;;  %3523 = vmatmul.mubr.f32.vlgmr.msra.gmra.mxu0 %v5772_v54 }
 0x1c2   : > { %3553 = vmatpush3.msra.mxu1 %v2290_v4  ;;  %3567 = vmatpush3.msra.mxu0 %v4937_v63  ;;  %v5773_v63 = vld [vmem:[#allocation19_spill] sm:$0xff] }
 0x1c3   : > { %3554 = vmatprep.subr.mxu1 %v2297_v51  ;;  %3568 = vmatprep.subr.mxu0 %v4949_v11 }
 0x1c4   : > { %3555 = vmatpush3.msra.mxu1 %v2297_v51  ;;  %3569 = vmatpush3.msra.mxu0 %v4949_v11  ;;  %v5774_v11 = vld [vmem:[#allocation22_spill] sm:$0xff] }
 0x1c5   : > { %3556 = vmatprep.subr.mxu1 %v2304_v42  ;;  %3570 = vmatprep.subr.mxu0 %v4971_v26 }
 0x1c6   : > { %3557 = vmatpush3.msra.mxu1 %v2304_v42  ;;  %3571 = vmatpush3.msra.mxu0 %v4971_v26  ;;  %v5775_v26 = vld [vmem:[#allocation37_spill] sm:$0xff] }
 0x1c7   : > { %3558 = vmatprep.subr.mxu1 %v2311_v14  ;;  %3572 = vmatprep.subr.mxu0 %v4982_v37 }
 0x1c8   : > { %3559 = vmatpush3.msra.mxu1 %v2311_v14  ;;  %3560 = vmatprep.mubr.f32.mxu1 %v5763_v55 }
 0x1c9   : > { %3573 = vmatpush3.msra.mxu0 %v4982_v37  ;;  %3561 = vmatmul.mubr.f32.vlgmr.msra.gmra.mxu1 %v5764_v45 }
 0x1ca   : > { %3574 = vmatprep.subr.mxu0 %v5000_v40  ;;  %3604 = vmatprep.subr.mxu1 %v4919_v41 }
 0x1cb   : > { %3575 = vmatpush3.msra.mxu0 %v5000_v40  ;;  %3605 = vmatpush3.msra.mxu1 %v4919_v41 }
 0x1cc   : > { %3576 = vmatprep.subr.mxu0 %v5013_v57  ;;  %3606 = vmatprep.subr.mxu1 %v4927_v27 }
 0x1cd   : > { %3577 = vmatpush3.msra.mxu0 %v5013_v57  ;;  %3607 = vmatpush3.msra.mxu1 %v4927_v27 }
 0x1ce   : > { %3578 = vmatprep.subr.mxu0 %v5033_v30  ;;  %3608 = vmatprep.subr.mxu1 %v4946_v10 }
 0x1cf   : > { %3579 = vmatpush3.msra.mxu0 %v5033_v30  ;;  %3609 = vmatpush3.msra.mxu1 %v4946_v10 }
 0x1d0   : > { %3580 = vmatprep.subr.mxu0 %v5044_v43  ;;  %3610 = vmatprep.subr.mxu1 %v4956_v7 }
 0x1d1   : > { %3581 = vmatpush3.msra.mxu0 %v5044_v43  ;;  %3611 = vmatpush3.msra.mxu1 %v4956_v7 }
 0x1d2   : > { %3582 = vmatprep.subr.mxu0 %v5058_v39  ;;  %3612 = vmatprep.subr.mxu1 %v4975_v12 }
 0x1d3   : > { %3583 = vmatpush3.msra.mxu0 %v5058_v39  ;;  %3613 = vmatpush3.msra.mxu1 %v4975_v12 }
 0x1d4   : > { %3584 = vmatprep.subr.mxu0 %v5072_v47  ;;  %3614 = vmatprep.subr.mxu1 %v4986_v38 }
 0x1d5   : > { %3585 = vmatpush3.msra.mxu0 %v5072_v47  ;;  %3615 = vmatpush3.msra.mxu1 %v4986_v38 }
 0x1d6   : > { %3586 = vmatprep.subr.mxu0 %v5085_v22  ;;  %3616 = vmatprep.subr.mxu1 %v5004_v52 }
 0x1d7   : > { %3587 = vmatpush3.msra.mxu0 %v5085_v22  ;;  %3617 = vmatpush3.msra.mxu1 %v5004_v52 }
 0x1d8   : > { %3588 = vmatprep.subr.mxu0 %v5097_v49  ;;  %3618 = vmatprep.subr.mxu1 %v5019_v58 }
 0x1d9   : > { %3589 = vmatpush3.msra.mxu0 %v5097_v49  ;;  %3619 = vmatpush3.msra.mxu1 %v5019_v58 }
 0x1da   : > { %3590 = vmatprep.subr.mxu0 %v5110_v48  ;;  %3620 = vmatprep.subr.mxu1 %v5030_v21 }
 0x1db   : > { %3591 = vmatpush3.msra.mxu0 %v5110_v48  ;;  %3621 = vmatpush3.msra.mxu1 %v5030_v21 }
 0x1dc   : > { %3592 = vmatprep.subr.mxu0 %v5126_v24  ;;  %3622 = vmatprep.subr.mxu1 %v5041_v5 }
 0x1dd   : > { %3525 = vmatprep.mubr.f32.mxu0 %v5773_v63  ;;  %3593 = vmatpush3.msra.mxu0 %v5126_v24 }
 0x1de   : > { %3623 = vmatpush3.msra.mxu1 %v5041_v5  ;;  %3526 = vmatmul.mubr.f32.gmra.mxu0 %v5774_v11 }
 0x1df   : > { %3594 = vmatprep.subr.mxu0 %v5136_v44  ;;  %3624 = vmatprep.subr.mxu1 %v5052_v60 }
 0x1e0   : > { %3595 = vmatpush3.msra.mxu0 %v5136_v44  ;;  %3625 = vmatpush3.msra.mxu1 %v5052_v60 }
 0x1e1   : > { %3596 = vmatprep.subr.mxu0 %v5146_v0  ;;  %3626 = vmatprep.subr.mxu1 %v5066_v25 }
 0x1e2   : > { %3597 = vmatpush3.msra.mxu0 %v5146_v0  ;;  %3598 = vmatprep.mubr.f32.mxu0 %v5775_v26 }
 0x1e3   : > { %3627 = vmatpush3.msra.mxu1 %v5066_v25  ;;  %3599 = vmatmul.mubr.f32.vlgmr.msra.gmra.mxu0 %v4730_v6  ;;  %v5777_v6 = vld [vmem:[#allocation26_spill] sm:$0xff] }
 0x1e4   : > { %3628 = vmatprep.subr.mxu1 %v5078_v9  ;;  %3642 = vmatprep.subr.mxu0 %v4960_v23 }
 0x1e5   : > { %3629 = vmatpush3.msra.mxu1 %v5078_v9  ;;  %3643 = vmatpush3.msra.mxu0 %v4960_v23 }
 0x1e6   : > { %3563 = vmatprep.mubr.f32.mxu1 %v5765_v20  ;;  %3630 = vmatprep.subr.mxu1 %v5100_v19 }
 0x1e7   : > { %3644 = vmatprep.subr.mxu0 %v4968_v17  ;;  %3564 = vmatmul.mubr.f32.gmra.mxu1 %v4751_v15 }
 0x1e8   : > { %3631 = vmatpush3.msra.mxu1 %v5100_v19  ;;  %3645 = vmatpush3.msra.mxu0 %v4968_v17 }
 0x1e9   : > { %3601 = vmatprep.mubr.f32.mxu0 %v4745_v16  ;;  %3632 = vmatprep.subr.mxu1 %v5113_v32  ;;  %v5779_v16 = vld [vmem:[#allocation28_spill] sm:$0xff] }
 0x1ea   : > { %3646 = vmatprep.subr.mxu0 %v4994_v46  ;;  %3602 = vmatmul.mubr.f32.gmra.mxu0 %v4767_v33 }
 0x1eb   : > { %3633 = vmatpush3.msra.mxu1 %v5113_v32  ;;  %3647 = vmatpush3.msra.mxu0 %v4994_v46 }
 0x1ec   : > { %3634 = vmatprep.subr.mxu1 %v5123_v1  ;;  %3648 = vmatprep.subr.mxu0 %v5007_v53 }
 0x1ed   : > { %3635 = vmatpush3.msra.mxu1 %v5123_v1  ;;  %3636 = vmatprep.mubr.f32.mxu1 %v5728_v13 }
 0x1ee   : > { %3649 = vmatpush3.msra.mxu0 %v5007_v53  ;;  %3637 = vmatmul.mubr.f32.vlgmr.msra.gmra.mxu1 %v4742_v31  ;;  %v5778_v31 = vld [vmem:[#allocation27_spill] sm:$0xff] }
 0x1ef   : > { %3650 = vmatprep.subr.mxu0 %v5024_v8  ;;  %3680 = vmatprep.subr.mxu1 %v4919_v41 }
 0x1f0   : > { %3651 = vmatpush3.msra.mxu0 %v5024_v8  ;;  %3681 = vmatpush3.msra.mxu1 %v4919_v41  ;;  %v1063_v8 = vlaneseq }
 0x1f1   : > { %3652 = vmatprep.subr.mxu0 %v5037_v35  ;;  %3682 = vmatprep.subr.mxu1 %v4927_v27 }
 0x1f2   : > { %3639 = vmatprep.mubr.f32.mxu1 %v4760_v29  ;;  %3653 = vmatpush3.msra.mxu0 %v5037_v35  ;;  %v5780_v29 = vld [vmem:[#allocation29_spill] sm:$0xff]  ;;  %v5328_v35 = vshrl.u32 %v1063_v8, 7 }
 0x1f3   : > { %3683 = vmatpush3.msra.mxu1 %v4927_v27  ;;  %3654 = vmatprep.subr.mxu0 %v5055_v56 }
 0x1f4   : > { %3640 = vmatmul.mubr.f32.gmra.mxu1 %v4782_v62  ;;  %3684 = vmatprep.subr.mxu1 %v4946_v10  ;;  %v5776_v62 = vld [vmem:[#allocation23_spill] sm:$0xff] }
 0x1f5   : > { %3655 = vmatpush3.msra.mxu0 %v5055_v56  ;;  %3685 = vmatpush3.msra.mxu1 %v4946_v10  ;;  %v5332_v56 = vld [vmem:[%s4126_s20] sm:$0x7]  ;;  %s3005_s20 = sadd.s32 %s3969_s27, %s3235_s30 }
 0x1f6   : > { %3656 = vmatprep.subr.mxu0 %v5069_v3  ;;  %3686 = vmatprep.subr.mxu1 %v4956_v7  ;;  %s5369_s17 = sshll.u32 %s3005_s20, 7 }
 0x1f7   : > { %3657 = vmatpush3.msra.mxu0 %v5069_v3  ;;  %3687 = vmatpush3.msra.mxu1 %v4956_v7  ;;  %s5381_s10 = scalar_lea.hbm %s5558_s5, %s5369_s17 }
 0x1f8   : > { %3658 = vmatprep.subr.mxu0 %v5081_v18  ;;  %3688 = vmatprep.subr.mxu1 %v4975_v12 }
 0x1f9   : > { %3659 = vmatpush3.msra.mxu0 %v5081_v18  ;;  %3689 = vmatpush3.msra.mxu1 %v4975_v12 }
 0x1fa   : > { %3660 = vmatprep.subr.mxu0 %v5776_v62  ;;  %3690 = vmatprep.subr.mxu1 %v4986_v38 }
 0x1fb   : > { %3661 = vmatpush3.msra.mxu0 %v5776_v62  ;;  %3691 = vmatpush3.msra.mxu1 %v4986_v38 }
 0x1fc   : > { %3662 = vmatprep.subr.mxu0 %v5777_v6  ;;  %3692 = vmatprep.subr.mxu1 %v5004_v52 }
 0x1fd   : > { %3663 = vmatpush3.msra.mxu0 %v5777_v6  ;;  %3693 = vmatpush3.msra.mxu1 %v5004_v52 }
 0x1fe   : > { %3664 = vmatprep.subr.mxu0 %v5120_v34  ;;  %3694 = vmatprep.subr.mxu1 %v5019_v58 }
 0x1ff   : > { %3665 = vmatpush3.msra.mxu0 %v5120_v34  ;;  %3695 = vmatpush3.msra.mxu1 %v5019_v58 }
 0x200   : > { %3666 = vmatprep.subr.mxu0 %v5778_v31  ;;  %3696 = vmatprep.subr.mxu1 %v5030_v21 }
 0x201   : > { %3667 = vmatpush3.msra.mxu0 %v5778_v31  ;;  %3697 = vmatpush3.msra.mxu1 %v5030_v21 }
 0x202   : > { %3668 = vmatprep.subr.mxu0 %v5779_v16  ;;  %3698 = vmatprep.subr.mxu1 %v5041_v5 }
 0x203   : > { %3669 = vmatpush3.msra.mxu0 %v5779_v16  ;;  %3699 = vmatpush3.msra.mxu1 %v5041_v5 }
 0x204   : > { %3670 = vmatprep.subr.mxu0 %v5780_v29  ;;  %3700 = vmatprep.subr.mxu1 %v5052_v60 }
 0x205   : > { %3671 = vmatpush3.msra.mxu0 %v5780_v29  ;;  %3701 = vmatpush3.msra.mxu1 %v5052_v60  ;;  %v1065_v60 = vsub.s32 0, %v5328_v35 }
 0x206   : > { %3672 = vmatprep.subr.mxu0 %v5160_v61  ;;  %3702 = vmatprep.subr.mxu1 %v5066_v25 }
 0x207   : > { %3673 = vmatpush3.msra.mxu0 %v5160_v61  ;;  %3674 = vmatprep.mubr.f32.mxu0 %v5763_v55  ;;  %v1066_v47 = vrot.slane %v5332_v56, %v1065_v60 }
 0x208   : > { %3703 = vmatpush3.msra.mxu1 %v5066_v25  ;;  %3675 = vmatmul.mubr.f32.vlgmr.msra.gmra.mxu0 %v5764_v45  ;;  %v1069_v25 = vsub.s32 1, %v5328_v35 }
 0x209   : > { %3704 = vmatprep.subr.mxu1 %v5078_v9  ;;  %3677 = vmatprep.mubr.f32.mxu0 %v5765_v20 }
 0x20a   : > { %3705 = vmatpush3.msra.mxu1 %v5078_v9  ;;  %3712 = vmatprep.mubr.f32.mxu1 %v5763_v55  ;;  %v1070_v18 = vrot.slane %v5332_v56, %v1069_v25 }
 0x20b   : > { %3706 = vmatprep.subr.mxu1 %v5100_v19  ;;  %v1181_v33 = vpop.f32.mrf.mxu0 }
 0x20c   : > { %3707 = vmatpush3.msra.mxu1 %v5100_v19  ;;  %3678 = vmatmul.mubr.f32.gmra.mxu0 %v4751_v15  ;;  %v1182_v49 = vadd.f32 %v1181_v33, %v1066_v47 }
 0x20d   : > { %3708 = vmatprep.subr.mxu1 %v5113_v32  ;;  %v1183_v13 = vpop.f32.mrf.mxu0 }
 0x20e   : > { %3709 = vmatpush3.msra.mxu1 %v5113_v32  ;;  %v1184_v48 = vadd.f32 %v1183_v13, %v1070_v18 }
 0x20f   : > { %3710 = vmatprep.subr.mxu1 %v5123_v1 }
 0x210   : > { %3711 = vmatpush3.msra.mxu1 %v5123_v1 }
 0x211   : > { %3713 = vmatmul.mubr.f32.vlgmr.msra.gmra.mxu1 %v5764_v45  ;;  %v1446_v10 = vpop.f32.mrf.mxu1 }
 0x212   : > { %3715 = vmatprep.mubr.f32.mxu1 %v5765_v20  ;;  %v1447_v34 = vadd.f32 %v1446_v10, %v1182_v49 }
 0x213   : > { %v1448_v7 = vpop.f32.mrf.mxu1 }
 0x214   : > { %v1449_v24 = vadd.f32 %v1448_v7, %v1184_v48 }
 0x215   : > { %3716 = vmatmul.mubr.f32.gmra.mxu1 %v4751_v15 }
 0x21f   : > { %v1192_v41 = vpop.f32.mrf.mxu0 }
 0x220   : > { %v1193_v28 = vadd.f32 %v1192_v41, %v1066_v47 }
 0x221   : > { %v1194_v27 = vpop.f32.mrf.mxu0 }
 0x222   : > { %v1195_v36 = vadd.f32 %v1194_v27, %v1070_v18 }
 0x223   : > { %v1203_v55 = vpop.f32.mrf.mxu0 }
 0x224   : > { %v1204_v63 = vadd.f32 %v1203_v55, %v1066_v47 }
 0x225   : > { %v1205_v17 = vpop.f32.mrf.mxu0 }
 0x226   : > { %v1206_v6 = vadd.f32 %v1205_v17, %v1070_v18 }
 0x228   : > { %v1453_v23 = vpop.f32.mrf.mxu1 }
 0x229   : > { %v1214_v37 = vpop.f32.mrf.mxu0  ;;  %v1454_v4 = vadd.f32 %v1453_v23, %v1193_v28 }
 0x22a   : > { %v1455_v12 = vpop.f32.mrf.mxu1 }
 0x22b   : > { %v5322_v46 = vpop.f32.mrf.mxu0  ;;  %v1456_v31 = vadd.f32 %v1455_v12, %v1195_v36 }
 0x22d   : > { %v1460_v38 = vpop.f32.mrf.mxu1 }
 0x22e   : > { %v1461_v27 = vadd.f32 %v1460_v38, %v1204_v63 }
 0x22f   : > { %v1462_v45 = vpop.f32.mrf.mxu1  ;;  %v1604_v40 = vpop.f32.mrf.mxu0 }
 0x230   : > { %v1605_v44 = vadd.f32 %v1604_v40, %v1447_v34 }
 0x231   : > { %v1606_v15 = vpop.f32.mrf.mxu0 }
 0x232   : > { %v1607_v14 = vadd.f32 %v1606_v15, %v1449_v24  ;;  %v1215_v15 = vadd.f32 %v1214_v37, %v1066_v47 }
 0x233   : > { %v5324_v52 = vpop.f32.mrf.mxu1 }
 0x235   : > { %v5326_v53 = vpop.f32.mrf.mxu1 }
 0x236   : > { %v1612_v57 = vpop.f32.mrf.mxu0 }
 0x237   : > { %v1613_v11 = vadd.f32 %v1612_v57, %v1454_v4 }
 0x238   : > { %v1614_v20 = vpop.f32.mrf.mxu0 }
 0x239   : > { %v1615_v10 = vadd.f32 %v1614_v20, %v1456_v31 }
 0x23b   : > { %v1734_v58 = vpop.f32.mrf.mxu1  ;;  %v1620_v30 = vpop.f32.mrf.mxu0 }
 0x23c   : > { %v1735_v50 = vadd.f32 %v1734_v58, %v1605_v44  ;;  %v1463_v58 = vadd.f32 %v1462_v45, %v1206_v6  ;;  %v1621_v8 = vadd.f32 %v1620_v30, %v1461_v27 }
 0x23d   : > { %v1736_v21 = vpop.f32.mrf.mxu1  ;;  %v1622_v43 = vpop.f32.mrf.mxu0 }
 0x23e   : > { %v1737_v51 = vadd.f32 %v1736_v21, %v1607_v14  ;;  %v1623_v25 = vadd.f32 %v1622_v43, %v1463_v58 }
 0x241   : > { %v1743_v5 = vpop.f32.mrf.mxu1  ;;  %v5335_v3 = vpop.f32.mrf.mxu0 }
 0x242   : > { %v1744_v29 = vadd.f32 %v1743_v5, %v1613_v11  ;;  %v1217_v5 = vadd.f32 %v5322_v46, %v1070_v18 }
 0x243   : > { %v1745_v39 = vpop.f32.mrf.mxu1  ;;  %v5339_v22 = vpop.f32.mrf.mxu0 }
 0x244   : > { %v1746_v55 = vadd.f32 %v1745_v39, %v1615_v10  ;;  %v1470_v34 = vadd.f32 %v5326_v53, %v1217_v5 }
 0x246   : > { %v1631_v44 = vadd.f32 %v5339_v22, %v1470_v34 }
 0x247   : > { %v1752_v9 = vpop.f32.mrf.mxu1 }
 0x248   : > { %v1753_v20 = vadd.f32 %v1752_v9, %v1621_v8 }
 0x249   : > { %v1754_v0 = vpop.f32.mrf.mxu1 }
 0x24a   : > { %v1755_v45 = vadd.f32 %v1754_v0, %v1623_v25 }
 0x24c   : > { %v1761_v1 = vpop.f32.mrf.mxu1 }
 0x24e   : > { %v1763_v61 = vpop.f32.mrf.mxu1 }
 0x24f   : > { %v1764_v4 = vadd.f32 %v1763_v61, %v1631_v44 }
 0x258   : > { %v1929_v19 = vpop.f32.mrf.mxu0 }
 0x259   : > { %v1930_v2 = vadd.f32 %v1929_v19, %v1735_v50 }
 0x25a   : > { %v1931_v32 = vpop.f32.mrf.mxu0 }
 0x25b   : > { %v1932_v26 = vadd.f32 %v1931_v32, %v1737_v51  ;;  %v1468_v32 = vadd.f32 %v5324_v52, %v1215_v15 }
 0x25d   : > { %v1629_v46 = vadd.f32 %v5335_v3, %v1468_v32 }
 0x25e   : > { %v1936_v59 = vpop.f32.mrf.mxu0 }
 0x25f   : > { %v1937_v7 = vadd.f32 %v1936_v59, %v1744_v29  ;;  %v1762_v52 = vadd.f32 %v1761_v1, %v1629_v46 }
 0x260   : > { %v1938_v54 = vpop.f32.mrf.mxu0 }
 0x261   : > { %v1939_v49 = vadd.f32 %v1938_v54, %v1746_v55 }
 0x263   : > { %v2054_v42 = vpop.f32.mrf.mxu1  ;;  %v1943_v33 = vpop.f32.mrf.mxu0 }
 0x264   : > { %v2055_v62 = vadd.f32 %v2054_v42, %v1930_v2  ;;  %v1944_v39 = vadd.f32 %v1943_v33, %v1753_v20 }
 0x265   : > { %v2056_v16 = vpop.f32.mrf.mxu1  ;;  %v1945_v17 = vpop.f32.mrf.mxu0 }
 0x266   : > { %v2850_v13 = vmax.f32 %v2055_v62, -12.0  ;;  %v5341_v41 = vadd.f32 %v2056_v16, %v1932_v26  ;;  %v1946_v9 = vadd.f32 %v1945_v17, %v1755_v45 }
 0x268   : > { %v2854_v23 = vmin.f32 %v2850_v13, 14.0  ;;  %v2890_v40 = vand.u32 2147483647, %v5341_v41  ;;  %vm2882_vm2 = vcmp.ne.f32.partialorder %v5341_v41, %v5341_v41 }
 0x269   : > { %v2061_v57 = vpop.f32.mrf.mxu1  ;;  %v1950_v30 = vpop.f32.mrf.mxu0 }
 0x26a   : > { %v2858_v21 = vmul.f32 1.442695, %v2854_v23  ;;  %v2894_v12 = vsub.f32 0.0, %v2890_v40  ;;  %v2062_v60 = vadd.f32 %v2061_v57, %v1937_v7  ;;  %v1951_v53 = vadd.f32 %v1950_v30, %v1762_v52 }
 0x26b   : > { %v2063_v19 = vpop.f32.mrf.mxu1  ;;  %v1952_v0 = vpop.f32.mrf.mxu0  ;;  %v2878_v30 = vmax.f32 %v5341_v41, 0.0 }
 0x26c   : > { %3805 = vpow2.f32 %v2858_v21  ;;  %v2898_v38 = vmul.f32 1.442695, %v2894_v12  ;;  %v2851_v48 = vmax.f32 %v2062_v60, -12.0  ;;  %v5346_v37 = vadd.f32 %v2063_v19, %v1939_v49 }
 0x26d   : > { %v1953_v42 = vadd.f32 %v1952_v0, %v1764_v4 }
 0x26e   : > { %3807 = vpow2.f32 %v2898_v38  ;;  %v2855_v47 = vmin.f32 %v2851_v48, 14.0  ;;  %v2891_v43 = vand.u32 2147483647, %v5346_v37 }
 0x26f   : > { %v2068_v18 = vpop.f32.mrf.mxu1 }
 0x270   : > { %v2860_v24 = vmul.f32 1.442695, %v2855_v47  ;;  %v2069_v28 = vadd.f32 %v2068_v18, %v1944_v39  ;;  %v2895_v59 = vsub.f32 0.0, %v2891_v43 }
 0x271   : > { %v2070_v14 = vpop.f32.mrf.mxu1 }
 0x272   : > { %3809 = vpow2.f32 %v2860_v24  ;;  %v2852_v50 = vmax.f32 %v2069_v28, -12.0  ;;  %v5352_v36 = vadd.f32 %v2070_v14, %v1946_v9  ;;  %v2900_v51 = vmul.f32 1.442695, %v2895_v59 }
 0x274   : > { %v2856_v3 = vmin.f32 %v2852_v50, 14.0  ;;  %v2892_v2 = vand.u32 2147483647, %v5352_v36  ;;  %v2075_v54 = vpop.f32.mrf.mxu1  ;;  %3811 = vpow2.f32 %v2900_v51 }
 0x275   : > { %v2076_v63 = vadd.f32 %v2075_v54, %v1951_v53 }
 0x276   : > { %v2862_v11 = vmul.f32 1.442695, %v2856_v3  ;;  %v2896_v22 = vsub.f32 0.0, %v2892_v2  ;;  %v2077_v1 = vpop.f32.mrf.mxu1 }
 0x277   : > { %v2853_v26 = vmax.f32 %v2076_v63, -12.0  ;;  %v5355_v62 = vadd.f32 %v2077_v1, %v1953_v42 }
 0x278   : > { %3813 = vpow2.f32 %v2862_v11  ;;  %v2902_v6 = vmul.f32 1.442695, %v2896_v22 }
 0x279   : > { %v3806_v31 = vpop.eup %3805  ;;  %v2857_v61 = vmin.f32 %v2853_v26, 14.0  ;;  %v2893_v16 = vand.u32 2147483647, %v5355_v62 }
 0x27a   : > { %v2866_v29 = vmax.f32 %v3806_v31, 1e-05  ;;  %3815 = vpow2.f32 %v2902_v6 }
 0x27b   : > { %v3808_v33 = vpop.eup %3807  ;;  %v2864_v13 = vmul.f32 1.442695, %v2857_v61  ;;  %v2897_v10 = vsub.f32 0.0, %v2893_v16 }
 0x27c   : > { %v2870_v27 = vmin.f32 %v2866_v29, 1000000.0  ;;  %v2906_v7 = vadd.f32 1.0, %v3808_v33  ;;  %v2909_v8 = vmul.f32 -0.5, %v3808_v33  ;;  %v2912_v49 = vand.u32 2147483647, %v3808_v33 }
 0x27d   : > { %3817 = vpow2.f32 %v2864_v13  ;;  %v2904_v23 = vmul.f32 1.442695, %v2897_v10 }
 0x27e   : > { %2874 = vst [vmem:[%s4128_s26] sm:$0xff] %v2870_v27  ;;  %3819 = vlog2.f32 %v2906_v7  ;;  %v2910_v60 = vadd.f32 1.0, %v2909_v8  ;;  %vm2913_vm1 = vcmp.lt.f32.partialorder %v2912_v49, 0.0004427343 }
 0x27f   : > { %v3810_v40 = vpop.eup %3809  ;;  %3821 = vpow2.f32 %v2904_v23 }
 0x280   : > { %v2867_v15 = vmax.f32 %v3810_v40, 1e-05  ;;  %v2911_v39 = vmul.f32 %v3808_v33, %v2910_v60 }
 0x281   : > { %v5359_v58 = vpop.eup %3811 }
 0x282   : > { %v2871_v55 = vmin.f32 %v2867_v15, 1000000.0  ;;  %v2915_v57 = vadd.f32 1.0, %v5359_v58  ;;  %v2918_v38 = vmul.f32 -0.5, %v5359_v58  ;;  %v2921_v9 = vand.u32 2147483647, %v5359_v58 }
 0x284   : > { %2875 = vst [vmem:[%s4128_s26 + $0x8] sm:$0xff] %v2871_v55  ;;  %3823 = vlog2.f32 %v2915_v57  ;;  %v2919_v18 = vadd.f32 1.0, %v2918_v38 }
 0x285   : > { %v3814_v21 = vpop.eup %3813 }
 0x286   : > { %v2868_v17 = vmax.f32 %v3814_v21, 1e-05 }
 0x287   : > { %v5364_v12 = vpop.eup %3815 }
 0x288   : > { %v2872_v5 = vmin.f32 %v2868_v17, 1000000.0  ;;  %v2924_v25 = vadd.f32 1.0, %v5364_v12  ;;  %v2927_v24 = vmul.f32 -0.5, %v5364_v12 }
 0x28a   : > { %v3818_v19 = vpop.eup %3817  ;;  %2876 = vst [vmem:[%s4128_s26 + $0x10] sm:$0xff] %v2872_v5  ;;  %3825 = vlog2.f32 %v2924_v25 }
 0x28b   : > { %v3820_v20 = vpop.eup %3819  ;;  %v2869_v48 = vmax.f32 %v3818_v19, 1e-05 }
 0x28c   : > { %v5373_v32 = vpop.eup %3821  ;;  %v2908_v45 = vmul.f32 0.6931472, %v3820_v20 }
 0x28d   : > { %v2873_v47 = vmin.f32 %v2869_v48, 1000000.0  ;;  %v2933_v34 = vadd.f32 1.0, %v5373_v32 }
 0x28e   : > { %v2914_v46 = vsel %vm2913_vm1, %v2911_v39, %v2908_v45 }
 0x28f   : > { %v2942_v43 = vadd.f32 %v2914_v46, %v2878_v30  ;;  %2877 = vst [vmem:[%s4128_s26 + $0x18] sm:$0xff] %v2873_v47  ;;  %3827 = vlog2.f32 %v2933_v34  ;;  %s3843_s26 = scalar_lea.vmem %s3842_s9, 1024 }
 0x290   : > { %p3845_p6 = scmp.lt.s32.totalorder %s3843_s26, %s3837_s12 }
 0x292   : > { %p3846_p7 = por %p3845_p6, %p3844_p5 }
 0x294   : > { %p3847_p9 = pnand %p3846_p7, %p3840_p4 }
 0x296   : > { %3850 = shalt.err (!%p3847_p9)
}
 0x297   : > { %s3851_s19 = scalar_lea.hbm %s5381_s10, 512  ;;  %s3855_s16 = scalar_lea.hbm %s5558_s5, 2048 }
 0x298   : > { %p3852_p10 = scmp.ne.s32.totalorder %s5381_s10, %s3851_s19  ;;  %p3856_p13 = scmp.lt.s32.totalorder %s5381_s10, %s5558_s5 }
 0x299   : > { %p3857_p0 = scmp.lt.s32.totalorder %s3855_s16, %s3851_s19 }
 0x29a   : > { %p3853_p11 = pnand %p3852_p10, %p4087_p3 }
 0x29b   : > { %p3858_p1 = por %p3857_p0, %p3856_p13 }
 0x29c   : > { %p3854_p12 = pneg %p3853_p11 }
 0x29e   : > { %p3859_p2 = pnand %p3858_p1, %p3854_p12 }
 0x2a0   : > { %3862 = shalt.err (!%p3859_p2)
}
 0x2a1   : > { %s3989_s27 = smov 128   ;;  %s3990_s28 = smov 256   ;;  %v2946_v28 = vsel %vm2882_vm2, %v5341_v41, %v2942_v43  ;;  %v3824_v44 = vpop.eup %3823  ;;  %v2920_v14 = vmul.f32 %v5359_v58, %v2919_v18  ;;  %v2879_v50 = vmax.f32 %v5346_v37, 0.0  ;;  %vm2922_vm3 = vcmp.lt.f32.partialorder %v2921_v9, 0.0004427343 }
 0x2a2   : > { %s3991_s23 = smov 8   ;;  %v2950_v52 = vmax.f32 %v2946_v28, 0.0001  ;;  %v2917_v59 = vmul.f32 0.6931472, %v3824_v44  ;;  %v2928_v4 = vadd.f32 1.0, %v2927_v24  ;;  %v3826_v54 = vpop.eup %3825  ;;  %vm2883_vm4 = vcmp.ne.f32.partialorder %v5346_v37, %v5346_v37  ;;  %s5452_s9 = scalar_lea.hbm %s5559_s6, %s5369_s17 }
 0x2a3   : > { %3720 = dma.vmem_to_hbm [thread:$0]  (%p4087_p3), %s5383_s18, 512, %s5381_s10, %s5392_s11, %s3989_s27, %s3990_s28, %s3991_s23   ;;  %v2930_v51 = vand.u32 2147483647, %v5364_v12  ;;  %v2936_v3 = vmul.f32 -0.5, %v5373_v32  ;;  %v2926_v42 = vmul.f32 0.6931472, %v3826_v54  ;;  %v3828_v16 = vpop.eup %3827  ;;  %vm2884_vm6 = vcmp.ne.f32.partialorder %v5352_v36, %v5352_v36 }
 0x2a4   : > { %v2954_v0 = vmin.f32 %v2950_v52, 10000.0  ;;  %v2923_v53 = vsel %vm2922_vm3, %v2920_v14, %v2917_v59  ;;  %v2929_v63 = vmul.f32 %v5364_v12, %v2928_v4  ;;  %v2880_v22 = vmax.f32 %v5352_v36, 0.0  ;;  %s5782_s18 = sadd.s32 4294967295, %s3985_s8   ;;  %s3026_s11 = sshll.u32 %s4130_s15, 4  ;;  %s5454_s11 = int_to_ptr.vmem [resolvable:$true] %s3026_s11 }
 0x2a5   : > { %v2943_v2 = vadd.f32 %v2923_v53, %v2879_v50  ;;  %vm2931_vm5 = vcmp.lt.f32.partialorder %v2930_v51, 0.0004427343  ;;  %v2937_v1 = vadd.f32 1.0, %v2936_v3  ;;  %v2939_v6 = vand.u32 2147483647, %v5373_v32  ;;  %s5443_s10 = sand.u32 1, %s5782_s18  }
 0x2a6   : > { %2958 = vst [vmem:[%s4130_s15] sm:$0xff] %v2954_v0  ;;  %v2932_v26 = vsel %vm2931_vm5, %v2929_v63, %v2926_v42  ;;  %v2935_v29 = vmul.f32 0.6931472, %v3828_v16  ;;  %v2881_v10 = vmax.f32 %v5355_v62, 0.0  ;;  %vm2885_vm8 = vcmp.ne.f32.partialorder %v5355_v62, %v5355_v62  ;;  %s2988_s26 = scalar_lea.sflag [#allocation6], %s5443_s10  ;;  %s3863_s19 = scalar_lea.vmem %s5454_s11, 512 }
 0x2a7   : > { %v2947_v41 = vsel %vm2883_vm4, %v5346_v37, %v2943_v2  ;;  %v2944_v61 = vadd.f32 %v2932_v26, %v2880_v22  ;;  %v2938_v33 = vmul.f32 %v5373_v32, %v2937_v1  ;;  %vm2940_vm7 = vcmp.lt.f32.partialorder %v2939_v6, 0.0004427343  ;;  %p3864_p4 = scmp.ne.s32.totalorder %s5454_s11, %s3863_s19  ;;  %s3992_s22 = smov [#allocation5]  }
 0x2a8   : > { %v2951_v11 = vmax.f32 %v2947_v41, 0.0001  ;;  %s3867_s13 = sshll.u32 %s3992_s22, 4  ;;  %s3868_s13 = int_to_ptr.vmem [resolvable:$false] %s3867_s13 }
 0x2a9   : > { %v2948_v37 = vsel %vm2884_vm6, %v5352_v36, %v2944_v61  ;;  %v2941_v27 = vsel %vm2940_vm7, %v2938_v33, %v2935_v29  ;;  %p3865_p5 = pnand %p3864_p4, %p4087_p3  ;;  %s3869_s16 = scalar_lea.vmem %s3868_s13, 1024 }
 0x2aa   : > { %v2955_v31 = vmin.f32 %v2951_v11, 10000.0  ;;  %v2952_v13 = vmax.f32 %v2948_v37, 0.0001  ;;  %v2945_v23 = vadd.f32 %v2941_v27, %v2881_v10  ;;  %p3870_p7 = scmp.lt.s32.totalorder %s5454_s11, %s3868_s13  ;;  %p3871_p9 = scmp.lt.s32.totalorder %s3869_s16, %s3863_s19 }
 0x2ab   : > { %p3866_p6 = pneg %p3865_p5 }
 0x2ac   : > { %2959 = vst [vmem:[%s4130_s15 + $0x8] sm:$0xff] %v2955_v31  ;;  %v2956_v7 = vmin.f32 %v2952_v13, 10000.0  ;;  %v2949_v36 = vsel %vm2885_vm8, %v5355_v62, %v2945_v23  ;;  %p3872_p10 = por %p3871_p9, %p3870_p7 }
 0x2ad   : > { %v2953_v40 = vmax.f32 %v2949_v36, 0.0001 }
 0x2ae   : > { %2960 = vst [vmem:[%s4130_s15 + $0x10] sm:$0xff] %v2956_v7  ;;  %p3873_p11 = pnand %p3872_p10, %p3866_p6 }
 0x2af   : > { %v2957_v15 = vmin.f32 %v2953_v40, 10000.0 }
 0x2b1   : > { %2961 = vst [vmem:[%s4130_s15 + $0x18] sm:$0xff] %v2957_v15 }
 0x2b2   : > { %3876 = shalt.err (!%p3873_p11)
}
 0x2b3   : > { %s3877_s15 = scalar_lea.hbm %s5452_s9, 512  ;;  %s3881_s18 = scalar_lea.hbm %s5559_s6, 2048 }
 0x2b4   : > { %p3878_p12 = scmp.ne.s32.totalorder %s5452_s9, %s3877_s15  ;;  %p3882_p1 = scmp.lt.s32.totalorder %s5452_s9, %s5559_s6 }
 0x2b5   : > { %p3883_p2 = scmp.lt.s32.totalorder %s3881_s18, %s3877_s15 }
 0x2b6   : > { %p3879_p13 = pnand %p3878_p12, %p4087_p3 }
 0x2b7   : > { %p3884_p4 = por %p3883_p2, %p3882_p1 }
 0x2b8   : > { %p3880_p0 = pneg %p3879_p13 }
 0x2ba   : > { %p3885_p5 = pnand %p3884_p4, %p3880_p0 }
 0x2bc   : > { %3888 = shalt.err (!%p3885_p5)
}
 0x2bd   : > { %3721 = dma.vmem_to_hbm [thread:$0]  (%p4087_p3), %s5454_s11, 512, %s5452_s9, %s2988_s26, %s3989_s27, %s3990_s28, %s3991_s23   ;;  %v3524_v62 = vpop.f32.mrf.mxu0  ;;  %v3562_v57 = vpop.f32.mrf.mxu1  ;;  %v1073_v60 = vsub.s32 2, %v5328_v35 }
 0x2be   : > { %s3044_s11 = sshll.u32 %s4132_s21, 4  ;;  %s5493_s22 = scalar_lea.hbm %s5560_s7, %s5369_s17  ;;  %s5495_s11 = int_to_ptr.vmem [resolvable:$true] %s3044_s11 }
 0x2bf   : > { %v2167_v58 = vpop.f32.mrf.mxu0  ;;  %v2348_v21 = vpop.f32.mrf.mxu1  ;;  %v1074_v49 = vrot.slane %v5332_v56, %v1073_v60  ;;  %s3889_s13 = scalar_lea.vmem %s5495_s11, 512  ;;  %s3993_s16 = smov [#allocation7]  }
 0x2c0   : > { %p3890_p6 = scmp.ne.s32.totalorder %s5495_s11, %s3889_s13  ;;  %s3893_s15 = sshll.u32 %s3993_s16, 4  ;;  %s3894_s15 = int_to_ptr.vmem [resolvable:$false] %s3893_s15 }
 0x2c1   : > { %v3527_v55 = vpop.f32.mrf.mxu0  ;;  %v3565_v12 = vpop.f32.mrf.mxu1  ;;  %v2178_v38 = vadd.f32 %v3524_v62, %v1074_v49  ;;  %v2168_v45 = vadd.f32 %v2167_v58, %v1074_v49  ;;  %s3895_s30 = scalar_lea.vmem %s3894_s15, 1024  ;;  %p3896_p10 = scmp.lt.s32.totalorder %s5495_s11, %s3894_s15 }
 0x2c2   : > { %v2198_v39 = vadd.f32 %v3527_v55, %v1074_v49  ;;  %p3891_p7 = pnand %p3890_p6, %p4087_p3  ;;  %p3897_p11 = scmp.lt.s32.totalorder %s3895_s30, %s3889_s13 }
 0x2c3   : > { %v2187_v8 = vpop.f32.mrf.mxu0  ;;  %v2360_v25 = vpop.f32.mrf.mxu1  ;;  %v2355_v47 = vadd.f32 %v3562_v57, %v2178_v38  ;;  %v2349_v18 = vadd.f32 %v2348_v21, %v2168_v45 }
 0x2c4   : > { %v2188_v34 = vadd.f32 %v2187_v8, %v1074_v49  ;;  %v2367_v24 = vadd.f32 %v3565_v12, %v2198_v39  ;;  %p3892_p9 = pneg %p3891_p7  ;;  %p3898_p12 = por %p3897_p11, %p3896_p10 }
 0x2c5   : > { %v3600_v17 = vpop.f32.mrf.mxu0  ;;  %v3638_v20 = vpop.f32.mrf.mxu1 }
 0x2c6   : > { %v2478_v9 = vadd.f32 %v3600_v17, %v2355_v47  ;;  %v2361_v28 = vadd.f32 %v2360_v25, %v2188_v34  ;;  %p3899_p13 = pnand %p3898_p12, %p3892_p9 }
 0x2c7   : > { %v2470_v5 = vpop.f32.mrf.mxu0  ;;  %v2580_v32 = vpop.f32.mrf.mxu1 }
 0x2c8   : > { %v2471_v35 = vadd.f32 %v2470_v5, %v2349_v18  ;;  %v2589_v44 = vadd.f32 %v3638_v20, %v2478_v9 }
 0x2c9   : > { %v3603_v19 = vpop.f32.mrf.mxu0  ;;  %v3641_v46 = vpop.f32.mrf.mxu1 }
 0x2ca   : > { %v2492_v59 = vadd.f32 %v3603_v19, %v2367_v24  ;;  %v2581_v14 = vadd.f32 %v2580_v32, %v2471_v35 }
 0x2cb   : > { %v2484_v48 = vpop.f32.mrf.mxu0  ;;  %v2596_v52 = vpop.f32.mrf.mxu1 }
 0x2cc   : > { %v2485_v4 = vadd.f32 %v2484_v48, %v2361_v28  ;;  %v2605_v53 = vadd.f32 %v3641_v46, %v2492_v59 }
 0x2cd   : > { %v3676_v30 = vpop.f32.mrf.mxu0 }
 0x2ce   : > { %v2730_v0 = vadd.f32 %v3676_v30, %v2589_v44  ;;  %v2597_v41 = vadd.f32 %v2596_v52, %v2485_v4 }
 0x2cf   : > { %v2723_v43 = vpop.f32.mrf.mxu0 }
 0x2d0   : > { %v2724_v51 = vadd.f32 %v2723_v43, %v2581_v14 }
 0x2d1   : > { %v3679_v56 = vpop.f32.mrf.mxu0  ;;  %v3714_v50 = vpop.f32.mrf.mxu1 }
 0x2d2   : > { %v2835_v3 = vadd.f32 %v3714_v50, %v2730_v0  ;;  %v2742_v42 = vadd.f32 %v3679_v56, %v2605_v53 }
 0x2d3   : > { %v2735_v2 = vpop.f32.mrf.mxu0  ;;  %v2828_v54 = vpop.f32.mrf.mxu1 }
 0x2d4   : > { %v2963_v63 = vmul.f32 0.5, %v2835_v3  ;;  %v2829_v11 = vadd.f32 %v2828_v54, %v2724_v51  ;;  %v2736_v1 = vadd.f32 %v2735_v2, %v2597_v41 }
 0x2d5   : > { %v3717_v22 = vpop.f32.mrf.mxu1 }
 0x2d6   : > { %3829 = vtanh.f32 %v2963_v63  ;;  %v2962_v26 = vmul.f32 0.5, %v2829_v11  ;;  %v2847_v6 = vadd.f32 %v3717_v22, %v2742_v42 }
 0x2d7   : > { %v2840_v31 = vpop.f32.mrf.mxu1 }
 0x2d8   : > { %3831 = vtanh.f32 %v2962_v26  ;;  %v2965_v61 = vmul.f32 0.5, %v2847_v6  ;;  %v2841_v16 = vadd.f32 %v2840_v31, %v2736_v1 }
 0x2da   : > { %3833 = vtanh.f32 %v2965_v61  ;;  %v2964_v37 = vmul.f32 0.5, %v2841_v16 }
 0x2dc   : > { %3835 = vtanh.f32 %v2964_v37 }
 0x2e3   : > { %v3830_v29 = vpop.eup %3829 }
 0x2e4   : > { %v2971_v33 = vmul.f32 0.5, %v3830_v29 }
 0x2e5   : > { %v3832_v13 = vpop.eup %3831 }
 0x2e6   : > { %v2975_v10 = vadd.f32 0.5, %v2971_v33  ;;  %v2970_v27 = vmul.f32 0.5, %v3832_v13 }
 0x2e7   : > { %v3834_v7 = vpop.eup %3833 }
 0x2e8   : > { %2979 = vst [vmem:[%s4132_s21 + $0x8] sm:$0xff] %v2975_v10  ;;  %v2974_v23 = vadd.f32 0.5, %v2970_v27  ;;  %v2973_v36 = vmul.f32 0.5, %v3834_v7 }
 0x2e9   : > { %v3836_v40 = vpop.eup %3835 }
 0x2ea   : > { %2978 = vst [vmem:[%s4132_s21] sm:$0xff] %v2974_v23  ;;  %v2977_v15 = vadd.f32 0.5, %v2973_v36  ;;  %v2972_v62 = vmul.f32 0.5, %v3836_v40 }
 0x2ec   : > { %2981 = vst [vmem:[%s4132_s21 + $0x18] sm:$0xff] %v2977_v15  ;;  %v2976_v58 = vadd.f32 0.5, %v2972_v62 }
 0x2ee   : > { %2980 = vst [vmem:[%s4132_s21 + $0x10] sm:$0xff] %v2976_v58 }
 0x2ef   : > { %3902 = shalt.err (!%p3899_p13)
}
 0x2f0   : > { %s3903_s17 = scalar_lea.hbm %s5493_s22, 512  ;;  %s3907_s18 = scalar_lea.hbm %s5560_s7, 2048 }
 0x2f1   : > { %p3904_p0 = scmp.ne.s32.totalorder %s5493_s22, %s3903_s17  ;;  %p3908_p4 = scmp.lt.s32.totalorder %s5493_s22, %s5560_s7 }
 0x2f2   : > { %p3909_p5 = scmp.lt.s32.totalorder %s3907_s18, %s3903_s17 }
 0x2f3   : > { %p3905_p1 = pnand %p3904_p0, %p4087_p3 }
 0x2f4   : > { %p3910_p6 = por %p3909_p5, %p3908_p4 }
 0x2f5   : > { %p3906_p2 = pneg %p3905_p1 }
 0x2f7   : > { %p3911_p7 = pnand %p3910_p6, %p3906_p2 }
 0x2f9   : > { %3914 = shalt.err (!%p3911_p7)
}
 0x2fa   : > { %3722 = dma.vmem_to_hbm [thread:$0]  (%p4087_p3), %s5495_s11, 512, %s5493_s22, %s2988_s26, %s3989_s27, %s3990_s28, %s3991_s23  }
 0x2fb PF: > { %p3736_p9 = scmp.ge.s32.totalorder %s3985_s8, 2  ;;  %s3059_s19 = sand.u32 1, %s3957_s24  }
 0x2fc   : > { %s3060_s13 = scalar_lea.sflag [#allocation4], %s3059_s19 }
 0x2fd   : > { %p3727_p10 = pnand %p3736_p9, %p4098_p8 }
 0x2ff   : > { %p3728_p11 = pneg %p3727_p10 }
 0x301   : > { %3948 = dma.done.wait (%p3728_p11), %s3060_s13, 512  }
 0x302   : > { %3950 = vsyncadd (%p3728_p11), %s3060_s13, 4294966784  ;;  %s5784_s14 = sadd.s32 4294967294, %s3985_s8  }
 0x303   : > { %s3068_s16 = sand.u32 1, %s5784_s14  }
 0x304   : > { %s3069_s15 = scalar_lea.sflag [#allocation6], %s3068_s16 }
 0x305   : > { %3952 = dma.done.wait (%p3728_p11), %s3069_s15, 1024  }
 0x306   : > { %3954 = vsyncadd (%p3728_p11), %s3069_s15, 4294966272  ;;  %s24_s8 = sadd.s32 1, %s3985_s8   ;;  %s5785_s27 = sld [smem:[#allocation10_spill]] }
 0x307   : > { %p21_p3 = scmp.ge.s32.totalorder %s24_s8, 6   ;;  %s5786_s26 = sld [smem:[#allocation16_spill]] }
 0x308   : > { %s5787_s28 = sld [smem:[#allocation11_spill]]  ;;  %s5791_s24 = smov %s3961_s25 }
 0x309   : > { %s5788_s23 = sld [smem:[#allocation12_spill]] }
 0x30a   : > { %s5789_s29 = sld [smem:[#allocation13_spill]] }
 0x30b   : > { %s5790_s30 = sld [smem:[#allocation14_spill]]  ;;  %23 = sbr.rel (!%p21_p3) target bundleno = 7 (0x7), region = 117 }
 0x30c   : > { %s5792_s25 = smov %s5785_s27 }
 0x30e   : > { %s5793_s27 = smov %s5787_s28 }
 0x30f   : > { %s5794_s28 = smov %s5788_s23 }
 0x310   :  { %3083 = vsyncpa [#allocation4], 1 }
 0x311   :  { %3085 = vsyncpa [#allocation4 + $0x1], 1 }
 0x312   :  { %3086 = vsyncpa [#allocation6], 1 }
 0x313   :  { %3088 = vsyncpa [#allocation6 + $0x1], 1 }

</bundles_post_ra>
